<compile_context>
chip_gen: v7x
topology: tpu7x:2x2x1
jax: 0.10.0
libtpu: 0.0.40
codegen_flags: <defaults>
</compile_context>

<pallas_src>
import functools
import math

import jax
import jax.numpy as jnp
from jax.experimental import pallas as pl
from jax.experimental.pallas import tpu as pltpu

# ----------------------------- config (small, synthetic) ---------------------
VOCAB_SIZE = 100
VOCAB_PAD = 128          # vocab padded to one lane group for the one-hot matmul
MAX_POS = 16
HIDDEN = 32
NUM_HEADS = 2
FFN = 64
NUM_LAYERS = 2
NUM_LEVEL1 = 5
NUM_LEAF = 11
LEAF_OFF = 64            # lane offset of leaf logits inside the [B,128] output slab
LN_EPS = 1e-12

_VMEM = pl.BlockSpec(memory_space=pltpu.MemorySpace.VMEM)


# ----------------------------- in-kernel helpers ------------------------------
def _layernorm(x, gamma, beta, eps=LN_EPS):
    mu = jnp.mean(x, axis=-1, keepdims=True)
    var = jnp.mean((x - mu) ** 2, axis=-1, keepdims=True)
    return (x - mu) * jax.lax.rsqrt(var + eps) * gamma + beta


def _gelu(x):
    c = math.sqrt(2.0 / math.pi)
    return 0.5 * x * (1.0 + jnp.tanh(c * (x + 0.044715 * x * x * x)))


def _softmax_approx(x):
    # attention softmax: approx reciprocal goes to the EUP slot (essentially free)
    z = x - jnp.max(x, axis=-1, keepdims=True)
    e = jnp.exp(z)
    return e * pl.reciprocal(jnp.sum(e, axis=-1, keepdims=True), approx=True)


def _softmax_exact(x):
    # gate softmax feeding the leaf head: exact normalization for parity
    z = x - jnp.max(x, axis=-1, keepdims=True)
    e = jnp.exp(z)
    return e / jnp.sum(e, axis=-1, keepdims=True)


# ----------------------------- fused forward kernel ---------------------------
def fused_forward_kernel(ids_ref, mask_ref, wemb_ref, misc_ref,
                         wqkv_ref, wo_ref, wf1_ref, wf2_ref, lvec_ref,
                         wcls_ref, wgate_ref, bhead_ref, *rest,
                         batch, seq, num_heads, num_layers, use_gate):
    if use_gate:
        gate_in_ref, out_ref = rest
    else:
        (out_ref,) = rest

    B, S = batch, seq
    BS = B * S
    H = HIDDEN
    dh = H // num_heads
    scale = 1.0 / math.sqrt(dh)

    # ---- embedding: one-hot gather on the MXU + pos/type + LayerNorm ----
    ids = ids_ref[...]                                                  # [BS, 1] i32
    vi = jax.lax.broadcasted_iota(jnp.int32, (BS, VOCAB_PAD), 1)
    onehot = jnp.where(vi == ids, 1.0, 0.0).astype(jnp.bfloat16)        # [BS, VP]
    emb = jnp.dot(onehot, wemb_ref[...], preferred_element_type=jnp.float32)

    misc = misc_ref[...]                                                # [MAX_POS+2, H] f32
    pos_type = misc[0:S, :]                                             # [S, H]
    emb = emb + jnp.concatenate([pos_type] * B, axis=0)                 # broadcast over batch
    x = _layernorm(emb,
                   misc[MAX_POS:MAX_POS + 1, :],
                   misc[MAX_POS + 1:MAX_POS + 2, :])                    # [BS, H] f32

    mask = mask_ref[...]                                                # [BS, BS] additive

    # ---- transformer layers (weights resident in VMEM, x never leaves) ----
    for l in range(num_layers):
        lv = lvec_ref[l]                                                # [8, 128] f32
        b_qkv = lv[0:1, :3 * H]
        b_f1 = lv[1:2, :FFN]
        bo = lv[2:3, :H]
        g1 = lv[3:4, :H]
        be1 = lv[4:5, :H]
        bf2 = lv[5:6, :H]
        g2 = lv[6:7, :H]
        be2 = lv[7:8, :H]

        # fused QKV projection: one [BS,H] @ [H,3H] matmul
        xb = x.astype(jnp.bfloat16)
        qkv = jnp.dot(xb, wqkv_ref[l], preferred_element_type=jnp.float32) + b_qkv

        # block-diagonal attention over the full [BS, BS] score matrix
        attn = None
        for h in range(num_heads):
            qb = qkv[:, h * dh:(h + 1) * dh].astype(jnp.bfloat16)
            kb = qkv[:, H + h * dh:H + (h + 1) * dh].astype(jnp.bfloat16)
            vb = qkv[:, 2 * H + h * dh:2 * H + (h + 1) * dh].astype(jnp.bfloat16)
            s = jax.lax.dot_general(qb, kb, (((1,), (1,)), ((), ())),
                                    preferred_element_type=jnp.float32)
            s = s * scale + mask                                        # [BS, BS]
            p = _softmax_approx(s).astype(jnp.bfloat16)
            ctx = jnp.dot(p, vb, preferred_element_type=jnp.float32)    # [BS, dh]
            part = jnp.dot(ctx.astype(jnp.bfloat16), wo_ref[l, h],
                           preferred_element_type=jnp.float32)          # [BS, H]
            attn = part if attn is None else attn + part
        attn = attn + bo

        h1 = _layernorm(x + attn, g1, be1)
        f1 = jnp.dot(h1.astype(jnp.bfloat16), wf1_ref[l],
                     preferred_element_type=jnp.float32) + b_f1
        f2 = jnp.dot(_gelu(f1).astype(jnp.bfloat16), wf2_ref[l],
                     preferred_element_type=jnp.float32) + bf2
        x = _layernorm(h1 + f2, g2, be2)

    # ---- cascade head on CLS rows (last_hidden_state[:, 0, :]) ----
    # nn.Dropout in eval mode is the identity (inference semantics).
    ri = jax.lax.broadcasted_iota(jnp.int32, (B, BS), 0)
    ci = jax.lax.broadcasted_iota(jnp.int32, (B, BS), 1)
    sel = jnp.where(ci == ri * S, 1.0, 0.0).astype(jnp.bfloat16)        # [B, BS] CLS selector
    cls = jnp.dot(sel, x.astype(jnp.bfloat16),
                  preferred_element_type=jnp.float32)                   # [B, H]

    # packed head: lanes [0:5] = level1 logits, lanes [64:75] = cls-part of leaf
    pre = jnp.dot(cls.astype(jnp.bfloat16), wcls_ref[...],
                  preferred_element_type=jnp.float32) + bhead_ref[...]  # [B, 128]
    logits1 = pre[:, :NUM_LEVEL1]
    if use_gate:
        gate = gate_in_ref[...]                                         # [B, NUM_LEVEL1] one-hot
    else:
        gate = _softmax_exact(logits1)
    # cat([cls, gate]) @ W_leaf == cls-part (already in pre) + gate @ W_gate
    out_ref[...] = pre + jnp.dot(gate, wgate_ref[...],
                                 preferred_element_type=jnp.float32)


# ----------------------------- parameter init (deterministic) -----------------
def init_params(key):
    std = 0.02
    ks = iter(jax.random.split(key, 24))
    nrm = lambda shape: (std * jax.random.normal(next(ks), shape)).astype(jnp.float32)

    dh = HIDDEN // NUM_HEADS
    bf16 = jnp.bfloat16

    # word embedding, vocab padded to 128 rows for the one-hot MXU gather
    word = nrm((VOCAB_SIZE, HIDDEN))
    word_pad = jnp.zeros((VOCAB_PAD, HIDDEN), jnp.float32).at[:VOCAB_SIZE].set(word)

    pos = nrm((MAX_POS, HIDDEN))
    typ0 = nrm((2, HIDDEN))[0]
    # misc slab: rows 0..MAX_POS-1 = pos_emb + type_emb[0], row MAX_POS = LN gamma,
    # row MAX_POS+1 = LN beta
    misc = jnp.concatenate([pos + typ0[None, :],
                            jnp.ones((1, HIDDEN), jnp.float32),
                            jnp.zeros((1, HIDDEN), jnp.float32)], axis=0)

    # fused QKV weight [L, H, 3H], column order [Q_h0 Q_h1 | K_h0 K_h1 | V_h0 V_h1]
    wqkv = nrm((NUM_LAYERS, HIDDEN, 3 * HIDDEN))
    # output projection, head-major row blocks [L, nh, dh, H]
    wo = nrm((NUM_LAYERS, NUM_HEADS, dh, HIDDEN))
    wf1 = nrm((NUM_LAYERS, HIDDEN, FFN))
    wf2 = nrm((NUM_LAYERS, FFN, HIDDEN))

    # packed per-layer f32 vectors [L, 8, 128]:
    #   row 0: fused QKV bias (lanes 0:3H)   row 1: FFN-1 bias (lanes 0:FFN)
    #   row 2: attn out bias  row 3/4: LN1 gamma/beta  row 5: FFN-2 bias
    #   row 6/7: LN2 gamma/beta
    lvec = jnp.zeros((NUM_LAYERS, 8, 128), jnp.float32)
    lvec = lvec.at[:, 3, :HIDDEN].set(1.0).at[:, 6, :HIDDEN].set(1.0)

    # cascade head, lane-packed: level1 at lanes [0:5], leaf at [64:75]
    fc1_w = nrm((HIDDEN, NUM_LEVEL1))
    fc2_w = nrm((HIDDEN + NUM_LEVEL1, NUM_LEAF))
    w_cls = jnp.zeros((HIDDEN, 128), jnp.float32)
    w_cls = w_cls.at[:, :NUM_LEVEL1].set(fc1_w)
    w_cls = w_cls.at[:, LEAF_OFF:LEAF_OFF + NUM_LEAF].set(fc2_w[:HIDDEN])
    w_gate = jnp.zeros((NUM_LEVEL1, 128), jnp.float32)
    w_gate = w_gate.at[:, LEAF_OFF:LEAF_OFF + NUM_LEAF].set(fc2_w[HIDDEN:])
    b_head = jnp.zeros((1, 128), jnp.float32)   # fc1_b / fc2_b are zero-init here

    return dict(
        word_emb=word_pad.astype(bf16),
        misc=misc,
        wqkv=wqkv.astype(bf16),
        wo=wo.astype(bf16),
        wf1=wf1.astype(bf16),
        wf2=wf2.astype(bf16),
        lvec=lvec,
        w_cls=w_cls.astype(bf16),
        w_gate=w_gate,          # f32: exact gate path for parity
        b_head=b_head,
    )


# ----------------------------- full forward (glue + ONE kernel) ---------------
def base_model_forward(params, input_ids, attention_mask, level1_labels=None):
    B, S = input_ids.shape
    assert S <= MAX_POS
    BS = B * S

    ids = input_ids.reshape(BS, 1).astype(jnp.int32)

    # block-diagonal additive attention mask [BS, BS]:
    # 0 where (same batch AND key attended), -1e9 otherwise
    am = attention_mask.reshape(BS).astype(jnp.float32)
    rb = jnp.arange(BS) // S
    same = rb[:, None] == rb[None, :]
    add_mask = jnp.where(same & (am[None, :] > 0.5), 0.0, -1e9).astype(jnp.float32)

    use_gate = level1_labels is not None
    args = [ids, add_mask, params["word_emb"], params["misc"],
            params["wqkv"], params["wo"], params["wf1"], params["wf2"],
            params["lvec"], params["w_cls"], params["w_gate"], params["b_head"]]
    if use_gate:
        args.append(jax.nn.one_hot(level1_labels, NUM_LEVEL1, dtype=jnp.float32))

    kernel = functools.partial(fused_forward_kernel,
                               batch=B, seq=S, num_heads=NUM_HEADS,
                               num_layers=NUM_LAYERS, use_gate=use_gate)
    out = pl.pallas_call(
        kernel,
        out_shape=jax.ShapeDtypeStruct((B, 128), jnp.float32),   # lane-dense slab
        in_specs=[_VMEM] * len(args),
        out_specs=_VMEM,
    )(*args)

    level1_logits = out[:, :NUM_LEVEL1]
    leaf_logits = out[:, LEAF_OFF:LEAF_OFF + NUM_LEAF]
    return level1_logits, leaf_logits


# ----------------------------- main -------------------------------------------
if __name__ == "__main__":
    key = jax.random.PRNGKey(0)
    k_param, k_ids, k_lab = jax.random.split(key, 3)

    params = init_params(k_param)

    B, S = 2, 8
    input_ids = jax.random.randint(k_ids, (B, S), 0, VOCAB_SIZE, dtype=jnp.int32)
    attention_mask = jnp.ones((B, S), jnp.int32).at[1, 6:].set(0)

    # Inference path (level1_labels=None -> exact softmax gating inside the kernel).
    level1_logits, leaf_logits = base_model_forward(params, input_ids, attention_mask)
    jax.block_until_ready((level1_logits, leaf_logits))
    assert level1_logits.shape == (B, NUM_LEVEL1)
    assert leaf_logits.shape == (B, NUM_LEAF)

    # Training-style path (one-hot level1 labels gate the leaf head).
    labels = jax.random.randint(k_lab, (B,), 0, NUM_LEVEL1, dtype=jnp.int32)
    l1_t, leaf_t = base_model_forward(params, input_ids, attention_mask, labels)
    jax.block_until_ready((l1_t, leaf_t))
    assert l1_t.shape == (B, NUM_LEVEL1) and leaf_t.shape == (B, NUM_LEAF)

    print("KERNEL_OK")
</pallas_src>

<mosaic_0001>
module attributes {stable_mosaic.version = 11 : i64} {
  func.func @fused_forward_kernel(%arg0: memref<16x1xi32, #tpu.memory_space<vmem>>, %arg1: memref<16x16xf32, #tpu.memory_space<vmem>>, %arg2: memref<128x32xbf16, #tpu.memory_space<vmem>>, %arg3: memref<18x32xf32, #tpu.memory_space<vmem>>, %arg4: memref<2x32x96xbf16, #tpu.memory_space<vmem>>, %arg5: memref<2x2x16x32xbf16, #tpu.memory_space<vmem>>, %arg6: memref<2x32x64xbf16, #tpu.memory_space<vmem>>, %arg7: memref<2x64x32xbf16, #tpu.memory_space<vmem>>, %arg8: memref<2x8x128xf32, #tpu.memory_space<vmem>>, %arg9: memref<32x128xbf16, #tpu.memory_space<vmem>>, %arg10: memref<5x128xf32, #tpu.memory_space<vmem>>, %arg11: memref<1x128xf32, #tpu.memory_space<vmem>>, %arg12: memref<2x128xf32, #tpu.memory_space<vmem>>) attributes {dimension_semantics = [], scalar_prefetch = 0 : i64, scratch_operands = 0 : i64, tpu.core_type = #tpu.core_type<tc>} {
    %c0 = arith.constant 0 : index
    %c0_0 = arith.constant 0 : index
    %0 = vector.load %arg0[%c0, %c0_0] : memref<16x1xi32, #tpu.memory_space<vmem>>, vector<16x1xi32>
    %1 = tpu.iota {dimensions = array<i32: 1>} : vector<16x128xi32>
    %2 = vector.broadcast %0 : vector<16x1xi32> to vector<16x128xi32>
    %3 = arith.cmpi eq, %1, %2 : vector<16x128xi32>
    %cst = arith.constant 1.000000e+00 : f32
    %cst_1 = arith.constant 0.000000e+00 : f32
    %4 = vector.broadcast %cst : f32 to vector<16x128xf32>
    %5 = vector.broadcast %cst_1 : f32 to vector<16x128xf32>
    %6 = arith.select %3, %4, %5 : vector<16x128xi1>, vector<16x128xf32>
    %7 = arith.truncf %6 : vector<16x128xf32> to vector<16x128xbf16>
    %c0_2 = arith.constant 0 : index
    %c0_3 = arith.constant 0 : index
    %8 = vector.load %arg2[%c0_2, %c0_3] : memref<128x32xbf16, #tpu.memory_space<vmem>>, vector<128x32xbf16>
    %cst_4 = arith.constant dense<0.000000e+00> : vector<16x32xf32>
    %9 = tpu.matmul %7, %8, %cst_4 {dimension_numbers = #tpu.dot_dimension_numbers<[1], [0], [0], [1], [0, 0, 1, 1], [], []>} : vector<16x128xbf16>, vector<128x32xbf16>, vector<16x32xf32> -> vector<16x32xf32>
    %c0_5 = arith.constant 0 : index
    %c0_6 = arith.constant 0 : index
    %10 = vector.load %arg3[%c0_5, %c0_6] : memref<18x32xf32, #tpu.memory_space<vmem>>, vector<18x32xf32>
    %11 = vector.extract_strided_slice %10 {offsets = [0, 0], sizes = [8, 32], strides = [1, 1]} : vector<18x32xf32> to vector<8x32xf32>
    %12 = tpu.concatenate %11, %11 in 0 : vector<8x32xf32>, vector<8x32xf32> -> vector<16x32xf32>
    %13 = arith.addf %9, %12 : vector<16x32xf32>
    %14 = vector.extract_strided_slice %10 {offsets = [16, 0], sizes = [1, 32], strides = [1, 1]} : vector<18x32xf32> to vector<1x32xf32>
    %15 = vector.extract_strided_slice %10 {offsets = [17, 0], sizes = [1, 32], strides = [1, 1]} : vector<18x32xf32> to vector<1x32xf32>
    %cst_7 = arith.constant dense<0.000000e+00> : vector<16xf32>
    %16 = vector.multi_reduction <add>, %13, %cst_7 [1] : vector<16x32xf32> to vector<16xf32>
    %17 = vector.shape_cast %16 : vector<16xf32> to vector<16x1xf32>
    %cst_8 = arith.constant 3.200000e+01 : f32
    %18 = vector.broadcast %cst_8 : f32 to vector<16x1xf32>
    %19 = arith.divf %17, %18 : vector<16x1xf32>
    %20 = vector.broadcast %19 : vector<16x1xf32> to vector<16x32xf32>
    %21 = arith.subf %13, %20 : vector<16x32xf32>
    %22 = arith.mulf %21, %21 : vector<16x32xf32>
    %cst_9 = arith.constant dense<0.000000e+00> : vector<16xf32>
    %23 = vector.multi_reduction <add>, %22, %cst_9 [1] : vector<16x32xf32> to vector<16xf32>
    %24 = vector.shape_cast %23 : vector<16xf32> to vector<16x1xf32>
    %cst_10 = arith.constant 3.200000e+01 : f32
    %25 = vector.broadcast %cst_10 : f32 to vector<16x1xf32>
    %26 = arith.divf %24, %25 : vector<16x1xf32>
    %27 = vector.broadcast %19 : vector<16x1xf32> to vector<16x32xf32>
    %28 = arith.subf %13, %27 : vector<16x32xf32>
    %cst_11 = arith.constant 9.99999996E-13 : f32
    %29 = vector.broadcast %cst_11 : f32 to vector<16x1xf32>
    %30 = arith.addf %26, %29 : vector<16x1xf32>
    %31 = math.rsqrt %30 : vector<16x1xf32>
    %32 = vector.broadcast %31 : vector<16x1xf32> to vector<16x32xf32>
    %33 = arith.mulf %28, %32 : vector<16x32xf32>
    %34 = vector.broadcast %14 : vector<1x32xf32> to vector<16x32xf32>
    %35 = arith.mulf %33, %34 : vector<16x32xf32>
    %36 = vector.broadcast %15 : vector<1x32xf32> to vector<16x32xf32>
    %37 = arith.addf %35, %36 : vector<16x32xf32>
    %c0_12 = arith.constant 0 : index
    %c0_13 = arith.constant 0 : index
    %38 = vector.load %arg1[%c0_12, %c0_13] : memref<16x16xf32, #tpu.memory_space<vmem>>, vector<16x16xf32>
    %c0_14 = arith.constant 0 : index
    %c0_15 = arith.constant 0 : index
    %c0_16 = arith.constant 0 : index
    %39 = vector.load %arg8[%c0_14, %c0_15, %c0_16] : memref<2x8x128xf32, #tpu.memory_space<vmem>>, vector<1x8x128xf32>
    %40 = vector.shape_cast %39 : vector<1x8x128xf32> to vector<8x128xf32>
    %41 = vector.extract_strided_slice %40 {offsets = [0, 0], sizes = [1, 96], strides = [1, 1]} : vector<8x128xf32> to vector<1x96xf32>
    %42 = vector.extract_strided_slice %40 {offsets = [1, 0], sizes = [1, 64], strides = [1, 1]} : vector<8x128xf32> to vector<1x64xf32>
    %43 = vector.extract_strided_slice %40 {offsets = [2, 0], sizes = [1, 32], strides = [1, 1]} : vector<8x128xf32> to vector<1x32xf32>
    %44 = vector.extract_strided_slice %40 {offsets = [3, 0], sizes = [1, 32], strides = [1, 1]} : vector<8x128xf32> to vector<1x32xf32>
    %45 = vector.extract_strided_slice %40 {offsets = [4, 0], sizes = [1, 32], strides = [1, 1]} : vector<8x128xf32> to vector<1x32xf32>
    %46 = vector.extract_strided_slice %40 {offsets = [5, 0], sizes = [1, 32], strides = [1, 1]} : vector<8x128xf32> to vector<1x32xf32>
    %47 = vector.extract_strided_slice %40 {offsets = [6, 0], sizes = [1, 32], strides = [1, 1]} : vector<8x128xf32> to vector<1x32xf32>
    %48 = vector.extract_strided_slice %40 {offsets = [7, 0], sizes = [1, 32], strides = [1, 1]} : vector<8x128xf32> to vector<1x32xf32>
    %49 = arith.truncf %37 : vector<16x32xf32> to vector<16x32xbf16>
    %c0_17 = arith.constant 0 : index
    %c0_18 = arith.constant 0 : index
    %c0_19 = arith.constant 0 : index
    %50 = vector.load %arg4[%c0_17, %c0_18, %c0_19] : memref<2x32x96xbf16, #tpu.memory_space<vmem>>, vector<1x32x96xbf16>
    %51 = vector.shape_cast %50 : vector<1x32x96xbf16> to vector<32x96xbf16>
    %cst_20 = arith.constant dense<0.000000e+00> : vector<16x96xf32>
    %52 = tpu.matmul %49, %51, %cst_20 {dimension_numbers = #tpu.dot_dimension_numbers<[1], [0], [0], [1], [0, 0, 1, 1], [], []>} : vector<16x32xbf16>, vector<32x96xbf16>, vector<16x96xf32> -> vector<16x96xf32>
    %53 = vector.broadcast %41 : vector<1x96xf32> to vector<16x96xf32>
    %54 = arith.addf %52, %53 : vector<16x96xf32>
    %55 = vector.extract_strided_slice %54 {offsets = [0, 0], sizes = [16, 16], strides = [1, 1]} : vector<16x96xf32> to vector<16x16xf32>
    %56 = arith.truncf %55 : vector<16x16xf32> to vector<16x16xbf16>
    %57 = vector.extract_strided_slice %54 {offsets = [0, 32], sizes = [16, 16], strides = [1, 1]} : vector<16x96xf32> to vector<16x16xf32>
    %58 = arith.truncf %57 : vector<16x16xf32> to vector<16x16xbf16>
    %59 = vector.extract_strided_slice %54 {offsets = [0, 64], sizes = [16, 16], strides = [1, 1]} : vector<16x96xf32> to vector<16x16xf32>
    %60 = arith.truncf %59 : vector<16x16xf32> to vector<16x16xbf16>
    %cst_21 = arith.constant dense<0.000000e+00> : vector<16x16xf32>
    %61 = tpu.matmul %56, %58, %cst_21 {dimension_numbers = #tpu.dot_dimension_numbers<[1], [1], [0], [0], [0, 0, 1, 0], [], []>} : vector<16x16xbf16>, vector<16x16xbf16>, vector<16x16xf32> -> vector<16x16xf32>
    %cst_22 = arith.constant 2.500000e-01 : f32
    %62 = vector.broadcast %cst_22 : f32 to vector<16x16xf32>
    %63 = arith.mulf %61, %62 : vector<16x16xf32>
    %64 = arith.addf %63, %38 : vector<16x16xf32>
    %cst_23 = arith.constant dense<0xFF800000> : vector<16xf32>
    %65 = vector.multi_reduction <maximumf>, %64, %cst_23 [1] : vector<16x16xf32> to vector<16xf32>
    %66 = vector.shape_cast %65 : vector<16xf32> to vector<16x1xf32>
    %67 = vector.broadcast %66 : vector<16x1xf32> to vector<16x16xf32>
    %68 = arith.subf %64, %67 : vector<16x16xf32>
    %69 = math.exp %68 : vector<16x16xf32>
    %cst_24 = arith.constant dense<0.000000e+00> : vector<16xf32>
    %70 = vector.multi_reduction <add>, %69, %cst_24 [1] : vector<16x16xf32> to vector<16xf32>
    %71 = vector.shape_cast %70 : vector<16xf32> to vector<16x1xf32>
    %72 = tpu.reciprocal %71 {approx = true} : vector<16x1xf32> -> vector<16x1xf32>
    %73 = vector.broadcast %72 : vector<16x1xf32> to vector<16x16xf32>
    %74 = arith.mulf %69, %73 : vector<16x16xf32>
    %75 = arith.truncf %74 : vector<16x16xf32> to vector<16x16xbf16>
    %cst_25 = arith.constant dense<0.000000e+00> : vector<16x16xf32>
    %76 = tpu.matmul %75, %60, %cst_25 {dimension_numbers = #tpu.dot_dimension_numbers<[1], [0], [0], [1], [0, 0, 1, 1], [], []>} : vector<16x16xbf16>, vector<16x16xbf16>, vector<16x16xf32> -> vector<16x16xf32>
    %77 = arith.truncf %76 : vector<16x16xf32> to vector<16x16xbf16>
    %c0_26 = arith.constant 0 : index
    %c0_27 = arith.constant 0 : index
    %c0_28 = arith.constant 0 : index
    %c0_29 = arith.constant 0 : index
    %78 = vector.load %arg5[%c0_26, %c0_27, %c0_28, %c0_29] : memref<2x2x16x32xbf16, #tpu.memory_space<vmem>>, vector<1x1x16x32xbf16>
    %79 = vector.shape_cast %78 : vector<1x1x16x32xbf16> to vector<16x32xbf16>
    %cst_30 = arith.constant dense<0.000000e+00> : vector<16x32xf32>
    %80 = tpu.matmul %77, %79, %cst_30 {dimension_numbers = #tpu.dot_dimension_numbers<[1], [0], [0], [1], [0, 0, 1, 1], [], []>} : vector<16x16xbf16>, vector<16x32xbf16>, vector<16x32xf32> -> vector<16x32xf32>
    %81 = vector.extract_strided_slice %54 {offsets = [0, 16], sizes = [16, 16], strides = [1, 1]} : vector<16x96xf32> to vector<16x16xf32>
    %82 = arith.truncf %81 : vector<16x16xf32> to vector<16x16xbf16>
    %83 = vector.extract_strided_slice %54 {offsets = [0, 48], sizes = [16, 16], strides = [1, 1]} : vector<16x96xf32> to vector<16x16xf32>
    %84 = arith.truncf %83 : vector<16x16xf32> to vector<16x16xbf16>
    %85 = vector.extract_strided_slice %54 {offsets = [0, 80], sizes = [16, 16], strides = [1, 1]} : vector<16x96xf32> to vector<16x16xf32>
    %86 = arith.truncf %85 : vector<16x16xf32> to vector<16x16xbf16>
    %cst_31 = arith.constant dense<0.000000e+00> : vector<16x16xf32>
    %87 = tpu.matmul %82, %84, %cst_31 {dimension_numbers = #tpu.dot_dimension_numbers<[1], [1], [0], [0], [0, 0, 1, 0], [], []>} : vector<16x16xbf16>, vector<16x16xbf16>, vector<16x16xf32> -> vector<16x16xf32>
    %cst_32 = arith.constant 2.500000e-01 : f32
    %88 = vector.broadcast %cst_32 : f32 to vector<16x16xf32>
    %89 = arith.mulf %87, %88 : vector<16x16xf32>
    %90 = arith.addf %89, %38 : vector<16x16xf32>
    %cst_33 = arith.constant dense<0xFF800000> : vector<16xf32>
    %91 = vector.multi_reduction <maximumf>, %90, %cst_33 [1] : vector<16x16xf32> to vector<16xf32>
    %92 = vector.shape_cast %91 : vector<16xf32> to vector<16x1xf32>
    %93 = vector.broadcast %92 : vector<16x1xf32> to vector<16x16xf32>
    %94 = arith.subf %90, %93 : vector<16x16xf32>
    %95 = math.exp %94 : vector<16x16xf32>
    %cst_34 = arith.constant dense<0.000000e+00> : vector<16xf32>
    %96 = vector.multi_reduction <add>, %95, %cst_34 [1] : vector<16x16xf32> to vector<16xf32>
    %97 = vector.shape_cast %96 : vector<16xf32> to vector<16x1xf32>
    %98 = tpu.reciprocal %97 {approx = true} : vector<16x1xf32> -> vector<16x1xf32>
    %99 = vector.broadcast %98 : vector<16x1xf32> to vector<16x16xf32>
    %100 = arith.mulf %95, %99 : vector<16x16xf32>
    %101 = arith.truncf %100 : vector<16x16xf32> to vector<16x16xbf16>
    %cst_35 = arith.constant dense<0.000000e+00> : vector<16x16xf32>
    %102 = tpu.matmul %101, %86, %cst_35 {dimension_numbers = #tpu.dot_dimension_numbers<[1], [0], [0], [1], [0, 0, 1, 1], [], []>} : vector<16x16xbf16>, vector<16x16xbf16>, vector<16x16xf32> -> vector<16x16xf32>
    %103 = arith.truncf %102 : vector<16x16xf32> to vector<16x16xbf16>
    %c0_36 = arith.constant 0 : index
    %c1 = arith.constant 1 : index
    %c0_37 = arith.constant 0 : index
    %c0_38 = arith.constant 0 : index
    %104 = vector.load %arg5[%c0_36, %c1, %c0_37, %c0_38] : memref<2x2x16x32xbf16, #tpu.memory_space<vmem>>, vector<1x1x16x32xbf16>
    %105 = vector.shape_cast %104 : vector<1x1x16x32xbf16> to vector<16x32xbf16>
    %cst_39 = arith.constant dense<0.000000e+00> : vector<16x32xf32>
    %106 = tpu.matmul %103, %105, %cst_39 {dimension_numbers = #tpu.dot_dimension_numbers<[1], [0], [0], [1], [0, 0, 1, 1], [], []>} : vector<16x16xbf16>, vector<16x32xbf16>, vector<16x32xf32> -> vector<16x32xf32>
    %107 = arith.addf %80, %106 : vector<16x32xf32>
    %108 = vector.broadcast %43 : vector<1x32xf32> to vector<16x32xf32>
    %109 = arith.addf %107, %108 : vector<16x32xf32>
    %110 = arith.addf %37, %109 : vector<16x32xf32>
    %cst_40 = arith.constant dense<0.000000e+00> : vector<16xf32>
    %111 = vector.multi_reduction <add>, %110, %cst_40 [1] : vector<16x32xf32> to vector<16xf32>
    %112 = vector.shape_cast %111 : vector<16xf32> to vector<16x1xf32>
    %cst_41 = arith.constant 3.200000e+01 : f32
    %113 = vector.broadcast %cst_41 : f32 to vector<16x1xf32>
    %114 = arith.divf %112, %113 : vector<16x1xf32>
    %115 = vector.broadcast %114 : vector<16x1xf32> to vector<16x32xf32>
    %116 = arith.subf %110, %115 : vector<16x32xf32>
    %117 = arith.mulf %116, %116 : vector<16x32xf32>
    %cst_42 = arith.constant dense<0.000000e+00> : vector<16xf32>
    %118 = vector.multi_reduction <add>, %117, %cst_42 [1] : vector<16x32xf32> to vector<16xf32>
    %119 = vector.shape_cast %118 : vector<16xf32> to vector<16x1xf32>
    %cst_43 = arith.constant 3.200000e+01 : f32
    %120 = vector.broadcast %cst_43 : f32 to vector<16x1xf32>
    %121 = arith.divf %119, %120 : vector<16x1xf32>
    %122 = vector.broadcast %114 : vector<16x1xf32> to vector<16x32xf32>
    %123 = arith.subf %110, %122 : vector<16x32xf32>
    %cst_44 = arith.constant 9.99999996E-13 : f32
    %124 = vector.broadcast %cst_44 : f32 to vector<16x1xf32>
    %125 = arith.addf %121, %124 : vector<16x1xf32>
    %126 = math.rsqrt %125 : vector<16x1xf32>
    %127 = vector.broadcast %126 : vector<16x1xf32> to vector<16x32xf32>
    %128 = arith.mulf %123, %127 : vector<16x32xf32>
    %129 = vector.broadcast %44 : vector<1x32xf32> to vector<16x32xf32>
    %130 = arith.mulf %128, %129 : vector<16x32xf32>
    %131 = vector.broadcast %45 : vector<1x32xf32> to vector<16x32xf32>
    %132 = arith.addf %130, %131 : vector<16x32xf32>
    %133 = arith.truncf %132 : vector<16x32xf32> to vector<16x32xbf16>
    %c0_45 = arith.constant 0 : index
    %c0_46 = arith.constant 0 : index
    %c0_47 = arith.constant 0 : index
    %134 = vector.load %arg6[%c0_45, %c0_46, %c0_47] : memref<2x32x64xbf16, #tpu.memory_space<vmem>>, vector<1x32x64xbf16>
    %135 = vector.shape_cast %134 : vector<1x32x64xbf16> to vector<32x64xbf16>
    %cst_48 = arith.constant dense<0.000000e+00> : vector<16x64xf32>
    %136 = tpu.matmul %133, %135, %cst_48 {dimension_numbers = #tpu.dot_dimension_numbers<[1], [0], [0], [1], [0, 0, 1, 1], [], []>} : vector<16x32xbf16>, vector<32x64xbf16>, vector<16x64xf32> -> vector<16x64xf32>
    %137 = vector.broadcast %42 : vector<1x64xf32> to vector<16x64xf32>
    %138 = arith.addf %136, %137 : vector<16x64xf32>
    %cst_49 = arith.constant 5.000000e-01 : f32
    %139 = vector.broadcast %cst_49 : f32 to vector<16x64xf32>
    %140 = arith.mulf %139, %138 : vector<16x64xf32>
    %cst_50 = arith.constant 4.471500e-02 : f32
    %141 = vector.broadcast %cst_50 : f32 to vector<16x64xf32>
    %142 = arith.mulf %141, %138 : vector<16x64xf32>
    %143 = arith.mulf %142, %138 : vector<16x64xf32>
    %144 = arith.mulf %143, %138 : vector<16x64xf32>
    %145 = arith.addf %138, %144 : vector<16x64xf32>
    %cst_51 = arith.constant 0.797884583 : f32
    %146 = vector.broadcast %cst_51 : f32 to vector<16x64xf32>
    %147 = arith.mulf %146, %145 : vector<16x64xf32>
    %148 = math.tanh %147 : vector<16x64xf32>
    %cst_52 = arith.constant 1.000000e+00 : f32
    %149 = vector.broadcast %cst_52 : f32 to vector<16x64xf32>
    %150 = arith.addf %149, %148 : vector<16x64xf32>
    %151 = arith.mulf %140, %150 : vector<16x64xf32>
    %152 = arith.truncf %151 : vector<16x64xf32> to vector<16x64xbf16>
    %c0_53 = arith.constant 0 : index
    %c0_54 = arith.constant 0 : index
    %c0_55 = arith.constant 0 : index
    %153 = vector.load %arg7[%c0_53, %c0_54, %c0_55] : memref<2x64x32xbf16, #tpu.memory_space<vmem>>, vector<1x64x32xbf16>
    %154 = vector.shape_cast %153 : vector<1x64x32xbf16> to vector<64x32xbf16>
    %cst_56 = arith.constant dense<0.000000e+00> : vector<16x32xf32>
    %155 = tpu.matmul %152, %154, %cst_56 {dimension_numbers = #tpu.dot_dimension_numbers<[1], [0], [0], [1], [0, 0, 1, 1], [], []>} : vector<16x64xbf16>, vector<64x32xbf16>, vector<16x32xf32> -> vector<16x32xf32>
    %156 = vector.broadcast %46 : vector<1x32xf32> to vector<16x32xf32>
    %157 = arith.addf %155, %156 : vector<16x32xf32>
    %158 = arith.addf %132, %157 : vector<16x32xf32>
    %cst_57 = arith.constant dense<0.000000e+00> : vector<16xf32>
    %159 = vector.multi_reduction <add>, %158, %cst_57 [1] : vector<16x32xf32> to vector<16xf32>
    %160 = vector.shape_cast %159 : vector<16xf32> to vector<16x1xf32>
    %cst_58 = arith.constant 3.200000e+01 : f32
    %161 = vector.broadcast %cst_58 : f32 to vector<16x1xf32>
    %162 = arith.divf %160, %161 : vector<16x1xf32>
    %163 = vector.broadcast %162 : vector<16x1xf32> to vector<16x32xf32>
    %164 = arith.subf %158, %163 : vector<16x32xf32>
    %165 = arith.mulf %164, %164 : vector<16x32xf32>
    %cst_59 = arith.constant dense<0.000000e+00> : vector<16xf32>
    %166 = vector.multi_reduction <add>, %165, %cst_59 [1] : vector<16x32xf32> to vector<16xf32>
    %167 = vector.shape_cast %166 : vector<16xf32> to vector<16x1xf32>
    %cst_60 = arith.constant 3.200000e+01 : f32
    %168 = vector.broadcast %cst_60 : f32 to vector<16x1xf32>
    %169 = arith.divf %167, %168 : vector<16x1xf32>
    %170 = vector.broadcast %162 : vector<16x1xf32> to vector<16x32xf32>
    %171 = arith.subf %158, %170 : vector<16x32xf32>
    %cst_61 = arith.constant 9.99999996E-13 : f32
    %172 = vector.broadcast %cst_61 : f32 to vector<16x1xf32>
    %173 = arith.addf %169, %172 : vector<16x1xf32>
    %174 = math.rsqrt %173 : vector<16x1xf32>
    %175 = vector.broadcast %174 : vector<16x1xf32> to vector<16x32xf32>
    %176 = arith.mulf %171, %175 : vector<16x32xf32>
    %177 = vector.broadcast %47 : vector<1x32xf32> to vector<16x32xf32>
    %178 = arith.mulf %176, %177 : vector<16x32xf32>
    %179 = vector.broadcast %48 : vector<1x32xf32> to vector<16x32xf32>
    %180 = arith.addf %178, %179 : vector<16x32xf32>
    %c1_62 = arith.constant 1 : index
    %c0_63 = arith.constant 0 : index
    %c0_64 = arith.constant 0 : index
    %181 = vector.load %arg8[%c1_62, %c0_63, %c0_64] : memref<2x8x128xf32, #tpu.memory_space<vmem>>, vector<1x8x128xf32>
    %182 = vector.shape_cast %181 : vector<1x8x128xf32> to vector<8x128xf32>
    %183 = vector.extract_strided_slice %182 {offsets = [0, 0], sizes = [1, 96], strides = [1, 1]} : vector<8x128xf32> to vector<1x96xf32>
    %184 = vector.extract_strided_slice %182 {offsets = [1, 0], sizes = [1, 64], strides = [1, 1]} : vector<8x128xf32> to vector<1x64xf32>
    %185 = vector.extract_strided_slice %182 {offsets = [2, 0], sizes = [1, 32], strides = [1, 1]} : vector<8x128xf32> to vector<1x32xf32>
    %186 = vector.extract_strided_slice %182 {offsets = [3, 0], sizes = [1, 32], strides = [1, 1]} : vector<8x128xf32> to vector<1x32xf32>
    %187 = vector.extract_strided_slice %182 {offsets = [4, 0], sizes = [1, 32], strides = [1, 1]} : vector<8x128xf32> to vector<1x32xf32>
    %188 = vector.extract_strided_slice %182 {offsets = [5, 0], sizes = [1, 32], strides = [1, 1]} : vector<8x128xf32> to vector<1x32xf32>
    %189 = vector.extract_strided_slice %182 {offsets = [6, 0], sizes = [1, 32], strides = [1, 1]} : vector<8x128xf32> to vector<1x32xf32>
    %190 = vector.extract_strided_slice %182 {offsets = [7, 0], sizes = [1, 32], strides = [1, 1]} : vector<8x128xf32> to vector<1x32xf32>
    %191 = arith.truncf %180 : vector<16x32xf32> to vector<16x32xbf16>
    %c1_65 = arith.constant 1 : index
    %c0_66 = arith.constant 0 : index
    %c0_67 = arith.constant 0 : index
    %192 = vector.load %arg4[%c1_65, %c0_66, %c0_67] : memref<2x32x96xbf16, #tpu.memory_space<vmem>>, vector<1x32x96xbf16>
    %193 = vector.shape_cast %192 : vector<1x32x96xbf16> to vector<32x96xbf16>
    %cst_68 = arith.constant dense<0.000000e+00> : vector<16x96xf32>
    %194 = tpu.matmul %191, %193, %cst_68 {dimension_numbers = #tpu.dot_dimension_numbers<[1], [0], [0], [1], [0, 0, 1, 1], [], []>} : vector<16x32xbf16>, vector<32x96xbf16>, vector<16x96xf32> -> vector<16x96xf32>
    %195 = vector.broadcast %183 : vector<1x96xf32> to vector<16x96xf32>
    %196 = arith.addf %194, %195 : vector<16x96xf32>
    %197 = vector.extract_strided_slice %196 {offsets = [0, 0], sizes = [16, 16], strides = [1, 1]} : vector<16x96xf32> to vector<16x16xf32>
    %198 = arith.truncf %197 : vector<16x16xf32> to vector<16x16xbf16>
    %199 = vector.extract_strided_slice %196 {offsets = [0, 32], sizes = [16, 16], strides = [1, 1]} : vector<16x96xf32> to vector<16x16xf32>
    %200 = arith.truncf %199 : vector<16x16xf32> to vector<16x16xbf16>
    %201 = vector.extract_strided_slice %196 {offsets = [0, 64], sizes = [16, 16], strides = [1, 1]} : vector<16x96xf32> to vector<16x16xf32>
    %202 = arith.truncf %201 : vector<16x16xf32> to vector<16x16xbf16>
    %cst_69 = arith.constant dense<0.000000e+00> : vector<16x16xf32>
    %203 = tpu.matmul %198, %200, %cst_69 {dimension_numbers = #tpu.dot_dimension_numbers<[1], [1], [0], [0], [0, 0, 1, 0], [], []>} : vector<16x16xbf16>, vector<16x16xbf16>, vector<16x16xf32> -> vector<16x16xf32>
    %cst_70 = arith.constant 2.500000e-01 : f32
    %204 = vector.broadcast %cst_70 : f32 to vector<16x16xf32>
    %205 = arith.mulf %203, %204 : vector<16x16xf32>
    %206 = arith.addf %205, %38 : vector<16x16xf32>
    %cst_71 = arith.constant dense<0xFF800000> : vector<16xf32>
    %207 = vector.multi_reduction <maximumf>, %206, %cst_71 [1] : vector<16x16xf32> to vector<16xf32>
    %208 = vector.shape_cast %207 : vector<16xf32> to vector<16x1xf32>
    %209 = vector.broadcast %208 : vector<16x1xf32> to vector<16x16xf32>
    %210 = arith.subf %206, %209 : vector<16x16xf32>
    %211 = math.exp %210 : vector<16x16xf32>
    %cst_72 = arith.constant dense<0.000000e+00> : vector<16xf32>
    %212 = vector.multi_reduction <add>, %211, %cst_72 [1] : vector<16x16xf32> to vector<16xf32>
    %213 = vector.shape_cast %212 : vector<16xf32> to vector<16x1xf32>
    %214 = tpu.reciprocal %213 {approx = true} : vector<16x1xf32> -> vector<16x1xf32>
    %215 = vector.broadcast %214 : vector<16x1xf32> to vector<16x16xf32>
    %216 = arith.mulf %211, %215 : vector<16x16xf32>
    %217 = arith.truncf %216 : vector<16x16xf32> to vector<16x16xbf16>
    %cst_73 = arith.constant dense<0.000000e+00> : vector<16x16xf32>
    %218 = tpu.matmul %217, %202, %cst_73 {dimension_numbers = #tpu.dot_dimension_numbers<[1], [0], [0], [1], [0, 0, 1, 1], [], []>} : vector<16x16xbf16>, vector<16x16xbf16>, vector<16x16xf32> -> vector<16x16xf32>
    %219 = arith.truncf %218 : vector<16x16xf32> to vector<16x16xbf16>
    %c1_74 = arith.constant 1 : index
    %c0_75 = arith.constant 0 : index
    %c0_76 = arith.constant 0 : index
    %c0_77 = arith.constant 0 : index
    %220 = vector.load %arg5[%c1_74, %c0_75, %c0_76, %c0_77] : memref<2x2x16x32xbf16, #tpu.memory_space<vmem>>, vector<1x1x16x32xbf16>
    %221 = vector.shape_cast %220 : vector<1x1x16x32xbf16> to vector<16x32xbf16>
    %cst_78 = arith.constant dense<0.000000e+00> : vector<16x32xf32>
    %222 = tpu.matmul %219, %221, %cst_78 {dimension_numbers = #tpu.dot_dimension_numbers<[1], [0], [0], [1], [0, 0, 1, 1], [], []>} : vector<16x16xbf16>, vector<16x32xbf16>, vector<16x32xf32> -> vector<16x32xf32>
    %223 = vector.extract_strided_slice %196 {offsets = [0, 16], sizes = [16, 16], strides = [1, 1]} : vector<16x96xf32> to vector<16x16xf32>
    %224 = arith.truncf %223 : vector<16x16xf32> to vector<16x16xbf16>
    %225 = vector.extract_strided_slice %196 {offsets = [0, 48], sizes = [16, 16], strides = [1, 1]} : vector<16x96xf32> to vector<16x16xf32>
    %226 = arith.truncf %225 : vector<16x16xf32> to vector<16x16xbf16>
    %227 = vector.extract_strided_slice %196 {offsets = [0, 80], sizes = [16, 16], strides = [1, 1]} : vector<16x96xf32> to vector<16x16xf32>
    %228 = arith.truncf %227 : vector<16x16xf32> to vector<16x16xbf16>
    %cst_79 = arith.constant dense<0.000000e+00> : vector<16x16xf32>
    %229 = tpu.matmul %224, %226, %cst_79 {dimension_numbers = #tpu.dot_dimension_numbers<[1], [1], [0], [0], [0, 0, 1, 0], [], []>} : vector<16x16xbf16>, vector<16x16xbf16>, vector<16x16xf32> -> vector<16x16xf32>
    %cst_80 = arith.constant 2.500000e-01 : f32
    %230 = vector.broadcast %cst_80 : f32 to vector<16x16xf32>
    %231 = arith.mulf %229, %230 : vector<16x16xf32>
    %232 = arith.addf %231, %38 : vector<16x16xf32>
    %cst_81 = arith.constant dense<0xFF800000> : vector<16xf32>
    %233 = vector.multi_reduction <maximumf>, %232, %cst_81 [1] : vector<16x16xf32> to vector<16xf32>
    %234 = vector.shape_cast %233 : vector<16xf32> to vector<16x1xf32>
    %235 = vector.broadcast %234 : vector<16x1xf32> to vector<16x16xf32>
    %236 = arith.subf %232, %235 : vector<16x16xf32>
    %237 = math.exp %236 : vector<16x16xf32>
    %cst_82 = arith.constant dense<0.000000e+00> : vector<16xf32>
    %238 = vector.multi_reduction <add>, %237, %cst_82 [1] : vector<16x16xf32> to vector<16xf32>
    %239 = vector.shape_cast %238 : vector<16xf32> to vector<16x1xf32>
    %240 = tpu.reciprocal %239 {approx = true} : vector<16x1xf32> -> vector<16x1xf32>
    %241 = vector.broadcast %240 : vector<16x1xf32> to vector<16x16xf32>
    %242 = arith.mulf %237, %241 : vector<16x16xf32>
    %243 = arith.truncf %242 : vector<16x16xf32> to vector<16x16xbf16>
    %cst_83 = arith.constant dense<0.000000e+00> : vector<16x16xf32>
    %244 = tpu.matmul %243, %228, %cst_83 {dimension_numbers = #tpu.dot_dimension_numbers<[1], [0], [0], [1], [0, 0, 1, 1], [], []>} : vector<16x16xbf16>, vector<16x16xbf16>, vector<16x16xf32> -> vector<16x16xf32>
    %245 = arith.truncf %244 : vector<16x16xf32> to vector<16x16xbf16>
    %c1_84 = arith.constant 1 : index
    %c1_85 = arith.constant 1 : index
    %c0_86 = arith.constant 0 : index
    %c0_87 = arith.constant 0 : index
    %246 = vector.load %arg5[%c1_84, %c1_85, %c0_86, %c0_87] : memref<2x2x16x32xbf16, #tpu.memory_space<vmem>>, vector<1x1x16x32xbf16>
    %247 = vector.shape_cast %246 : vector<1x1x16x32xbf16> to vector<16x32xbf16>
    %cst_88 = arith.constant dense<0.000000e+00> : vector<16x32xf32>
    %248 = tpu.matmul %245, %247, %cst_88 {dimension_numbers = #tpu.dot_dimension_numbers<[1], [0], [0], [1], [0, 0, 1, 1], [], []>} : vector<16x16xbf16>, vector<16x32xbf16>, vector<16x32xf32> -> vector<16x32xf32>
    %249 = arith.addf %222, %248 : vector<16x32xf32>
    %250 = vector.broadcast %185 : vector<1x32xf32> to vector<16x32xf32>
    %251 = arith.addf %249, %250 : vector<16x32xf32>
    %252 = arith.addf %180, %251 : vector<16x32xf32>
    %cst_89 = arith.constant dense<0.000000e+00> : vector<16xf32>
    %253 = vector.multi_reduction <add>, %252, %cst_89 [1] : vector<16x32xf32> to vector<16xf32>
    %254 = vector.shape_cast %253 : vector<16xf32> to vector<16x1xf32>
    %cst_90 = arith.constant 3.200000e+01 : f32
    %255 = vector.broadcast %cst_90 : f32 to vector<16x1xf32>
    %256 = arith.divf %254, %255 : vector<16x1xf32>
    %257 = vector.broadcast %256 : vector<16x1xf32> to vector<16x32xf32>
    %258 = arith.subf %252, %257 : vector<16x32xf32>
    %259 = arith.mulf %258, %258 : vector<16x32xf32>
    %cst_91 = arith.constant dense<0.000000e+00> : vector<16xf32>
    %260 = vector.multi_reduction <add>, %259, %cst_91 [1] : vector<16x32xf32> to vector<16xf32>
    %261 = vector.shape_cast %260 : vector<16xf32> to vector<16x1xf32>
    %cst_92 = arith.constant 3.200000e+01 : f32
    %262 = vector.broadcast %cst_92 : f32 to vector<16x1xf32>
    %263 = arith.divf %261, %262 : vector<16x1xf32>
    %264 = vector.broadcast %256 : vector<16x1xf32> to vector<16x32xf32>
    %265 = arith.subf %252, %264 : vector<16x32xf32>
    %cst_93 = arith.constant 9.99999996E-13 : f32
    %266 = vector.broadcast %cst_93 : f32 to vector<16x1xf32>
    %267 = arith.addf %263, %266 : vector<16x1xf32>
    %268 = math.rsqrt %267 : vector<16x1xf32>
    %269 = vector.broadcast %268 : vector<16x1xf32> to vector<16x32xf32>
    %270 = arith.mulf %265, %269 : vector<16x32xf32>
    %271 = vector.broadcast %186 : vector<1x32xf32> to vector<16x32xf32>
    %272 = arith.mulf %270, %271 : vector<16x32xf32>
    %273 = vector.broadcast %187 : vector<1x32xf32> to vector<16x32xf32>
    %274 = arith.addf %272, %273 : vector<16x32xf32>
    %275 = arith.truncf %274 : vector<16x32xf32> to vector<16x32xbf16>
    %c1_94 = arith.constant 1 : index
    %c0_95 = arith.constant 0 : index
    %c0_96 = arith.constant 0 : index
    %276 = vector.load %arg6[%c1_94, %c0_95, %c0_96] : memref<2x32x64xbf16, #tpu.memory_space<vmem>>, vector<1x32x64xbf16>
    %277 = vector.shape_cast %276 : vector<1x32x64xbf16> to vector<32x64xbf16>
    %cst_97 = arith.constant dense<0.000000e+00> : vector<16x64xf32>
    %278 = tpu.matmul %275, %277, %cst_97 {dimension_numbers = #tpu.dot_dimension_numbers<[1], [0], [0], [1], [0, 0, 1, 1], [], []>} : vector<16x32xbf16>, vector<32x64xbf16>, vector<16x64xf32> -> vector<16x64xf32>
    %279 = vector.broadcast %184 : vector<1x64xf32> to vector<16x64xf32>
    %280 = arith.addf %278, %279 : vector<16x64xf32>
    %cst_98 = arith.constant 5.000000e-01 : f32
    %281 = vector.broadcast %cst_98 : f32 to vector<16x64xf32>
    %282 = arith.mulf %281, %280 : vector<16x64xf32>
    %cst_99 = arith.constant 4.471500e-02 : f32
    %283 = vector.broadcast %cst_99 : f32 to vector<16x64xf32>
    %284 = arith.mulf %283, %280 : vector<16x64xf32>
    %285 = arith.mulf %284, %280 : vector<16x64xf32>
    %286 = arith.mulf %285, %280 : vector<16x64xf32>
    %287 = arith.addf %280, %286 : vector<16x64xf32>
    %cst_100 = arith.constant 0.797884583 : f32
    %288 = vector.broadcast %cst_100 : f32 to vector<16x64xf32>
    %289 = arith.mulf %288, %287 : vector<16x64xf32>
    %290 = math.tanh %289 : vector<16x64xf32>
    %cst_101 = arith.constant 1.000000e+00 : f32
    %291 = vector.broadcast %cst_101 : f32 to vector<16x64xf32>
    %292 = arith.addf %291, %290 : vector<16x64xf32>
    %293 = arith.mulf %282, %292 : vector<16x64xf32>
    %294 = arith.truncf %293 : vector<16x64xf32> to vector<16x64xbf16>
    %c1_102 = arith.constant 1 : index
    %c0_103 = arith.constant 0 : index
    %c0_104 = arith.constant 0 : index
    %295 = vector.load %arg7[%c1_102, %c0_103, %c0_104] : memref<2x64x32xbf16, #tpu.memory_space<vmem>>, vector<1x64x32xbf16>
    %296 = vector.shape_cast %295 : vector<1x64x32xbf16> to vector<64x32xbf16>
    %cst_105 = arith.constant dense<0.000000e+00> : vector<16x32xf32>
    %297 = tpu.matmul %294, %296, %cst_105 {dimension_numbers = #tpu.dot_dimension_numbers<[1], [0], [0], [1], [0, 0, 1, 1], [], []>} : vector<16x64xbf16>, vector<64x32xbf16>, vector<16x32xf32> -> vector<16x32xf32>
    %298 = vector.broadcast %188 : vector<1x32xf32> to vector<16x32xf32>
    %299 = arith.addf %297, %298 : vector<16x32xf32>
    %300 = arith.addf %274, %299 : vector<16x32xf32>
    %cst_106 = arith.constant dense<0.000000e+00> : vector<16xf32>
    %301 = vector.multi_reduction <add>, %300, %cst_106 [1] : vector<16x32xf32> to vector<16xf32>
    %302 = vector.shape_cast %301 : vector<16xf32> to vector<16x1xf32>
    %cst_107 = arith.constant 3.200000e+01 : f32
    %303 = vector.broadcast %cst_107 : f32 to vector<16x1xf32>
    %304 = arith.divf %302, %303 : vector<16x1xf32>
    %305 = vector.broadcast %304 : vector<16x1xf32> to vector<16x32xf32>
    %306 = arith.subf %300, %305 : vector<16x32xf32>
    %307 = arith.mulf %306, %306 : vector<16x32xf32>
    %cst_108 = arith.constant dense<0.000000e+00> : vector<16xf32>
    %308 = vector.multi_reduction <add>, %307, %cst_108 [1] : vector<16x32xf32> to vector<16xf32>
    %309 = vector.shape_cast %308 : vector<16xf32> to vector<16x1xf32>
    %cst_109 = arith.constant 3.200000e+01 : f32
    %310 = vector.broadcast %cst_109 : f32 to vector<16x1xf32>
    %311 = arith.divf %309, %310 : vector<16x1xf32>
    %312 = vector.broadcast %304 : vector<16x1xf32> to vector<16x32xf32>
    %313 = arith.subf %300, %312 : vector<16x32xf32>
    %cst_110 = arith.constant 9.99999996E-13 : f32
    %314 = vector.broadcast %cst_110 : f32 to vector<16x1xf32>
    %315 = arith.addf %311, %314 : vector<16x1xf32>
    %316 = math.rsqrt %315 : vector<16x1xf32>
    %317 = vector.broadcast %316 : vector<16x1xf32> to vector<16x32xf32>
    %318 = arith.mulf %313, %317 : vector<16x32xf32>
    %319 = vector.broadcast %189 : vector<1x32xf32> to vector<16x32xf32>
    %320 = arith.mulf %318, %319 : vector<16x32xf32>
    %321 = vector.broadcast %190 : vector<1x32xf32> to vector<16x32xf32>
    %322 = arith.addf %320, %321 : vector<16x32xf32>
    %323 = tpu.iota {dimensions = array<i32: 0>} : vector<2x16xi32>
    %324 = tpu.iota {dimensions = array<i32: 1>} : vector<2x16xi32>
    %c8_i32 = arith.constant 8 : i32
    %325 = vector.broadcast %c8_i32 : i32 to vector<2x16xi32>
    %326 = arith.muli %323, %325 : vector<2x16xi32>
    %327 = arith.cmpi eq, %324, %326 : vector<2x16xi32>
    %cst_111 = arith.constant 1.000000e+00 : f32
    %cst_112 = arith.constant 0.000000e+00 : f32
    %328 = vector.broadcast %cst_111 : f32 to vector<2x16xf32>
    %329 = vector.broadcast %cst_112 : f32 to vector<2x16xf32>
    %330 = arith.select %327, %328, %329 : vector<2x16xi1>, vector<2x16xf32>
    %331 = arith.truncf %330 : vector<2x16xf32> to vector<2x16xbf16>
    %332 = arith.truncf %322 : vector<16x32xf32> to vector<16x32xbf16>
    %cst_113 = arith.constant dense<0.000000e+00> : vector<2x32xf32>
    %333 = tpu.matmul %331, %332, %cst_113 {dimension_numbers = #tpu.dot_dimension_numbers<[1], [0], [0], [1], [0, 0, 1, 1], [], []>} : vector<2x16xbf16>, vector<16x32xbf16>, vector<2x32xf32> -> vector<2x32xf32>
    %334 = arith.truncf %333 : vector<2x32xf32> to vector<2x32xbf16>
    %c0_114 = arith.constant 0 : index
    %c0_115 = arith.constant 0 : index
    %335 = vector.load %arg9[%c0_114, %c0_115] : memref<32x128xbf16, #tpu.memory_space<vmem>>, vector<32x128xbf16>
    %cst_116 = arith.constant dense<0.000000e+00> : vector<2x128xf32>
    %336 = tpu.matmul %334, %335, %cst_116 {dimension_numbers = #tpu.dot_dimension_numbers<[1], [0], [0], [1], [0, 0, 1, 1], [], []>} : vector<2x32xbf16>, vector<32x128xbf16>, vector<2x128xf32> -> vector<2x128xf32>
    %c0_117 = arith.constant 0 : index
    %c0_118 = arith.constant 0 : index
    %337 = vector.load %arg11[%c0_117, %c0_118] : memref<1x128xf32, #tpu.memory_space<vmem>>, vector<1x128xf32>
    %338 = vector.broadcast %337 : vector<1x128xf32> to vector<2x128xf32>
    %339 = arith.addf %336, %338 : vector<2x128xf32>
    %340 = vector.extract_strided_slice %339 {offsets = [0, 0], sizes = [2, 5], strides = [1, 1]} : vector<2x128xf32> to vector<2x5xf32>
    %cst_119 = arith.constant dense<0xFF800000> : vector<2xf32>
    %341 = vector.multi_reduction <maximumf>, %340, %cst_119 [1] : vector<2x5xf32> to vector<2xf32>
    %342 = vector.shape_cast %341 : vector<2xf32> to vector<2x1xf32>
    %343 = vector.broadcast %342 : vector<2x1xf32> to vector<2x5xf32>
    %344 = arith.subf %340, %343 : vector<2x5xf32>
    %345 = math.exp %344 : vector<2x5xf32>
    %cst_120 = arith.constant dense<0.000000e+00> : vector<2xf32>
    %346 = vector.multi_reduction <add>, %345, %cst_120 [1] : vector<2x5xf32> to vector<2xf32>
    %347 = vector.shape_cast %346 : vector<2xf32> to vector<2x1xf32>
    %348 = vector.broadcast %347 : vector<2x1xf32> to vector<2x5xf32>
    %349 = arith.divf %345, %348 : vector<2x5xf32>
    %c0_121 = arith.constant 0 : index
    %c0_122 = arith.constant 0 : index
    %350 = vector.load %arg10[%c0_121, %c0_122] : memref<5x128xf32, #tpu.memory_space<vmem>>, vector<5x128xf32>
    %cst_123 = arith.constant dense<0.000000e+00> : vector<2x128xf32>
    %351 = tpu.matmul %349, %350, %cst_123 {dimension_numbers = #tpu.dot_dimension_numbers<[1], [0], [0], [1], [0, 0, 1, 1], [], []>} : vector<2x5xf32>, vector<5x128xf32>, vector<2x128xf32> -> vector<2x128xf32>
    %352 = arith.addf %339, %351 : vector<2x128xf32>
    %c0_124 = arith.constant 0 : index
    %c0_125 = arith.constant 0 : index
    %353 = vector.load %arg12[%c0_124, %c0_125] : memref<2x128xf32, #tpu.memory_space<vmem>>, vector<2x128xf32>
    tpu.vector_store %arg12[%c0_124, %c0_125], %352 {strides = array<i32>} : memref<2x128xf32, #tpu.memory_space<vmem>>, vector<2x128xf32>,
    return
  }
}

</mosaic_0001>

<bundles_post_ra>
// kernel: tpu_custom_call.1
= control target key start
LH: loop header
LB: loop body
LE: loop exit
PB: predicated region body
PF: predicated region fallthrough
CT: control target
= control target key end

     0   :  { %v2220_v1 = vmov 0   ;;  %v2221_v2 = vmov 0.0   ;;  %vm2222_vm0 = vmmov 0   ;;  %s2696_s0 = inlined_call_operand.vmem [shape: s32[16,1], index: 0, kind: input, shape index: {}]   ;;  %s2697_s1 = inlined_call_operand.vmem [shape: f32[16,16], index: 1, kind: input, shape index: {}]   ;;  %s2698_s2 = inlined_call_operand.vmem [shape: bf16[128,32], index: 2, kind: input, shape index: {}]   ;;  %s2699_s3 = inlined_call_operand.vmem [shape: f32[18,32], index: 3, kind: input, shape index: {}]   ;;  %s2700_s4 = inlined_call_operand.vmem [shape: bf16[2,32,96], index: 4, kind: input, shape index: {}]   ;;  %s2701_s5 = inlined_call_operand.vmem [shape: bf16[2,2,16,32], index: 5, kind: input, shape index: {}]   ;;  %s2702_s6 = inlined_call_operand.vmem [shape: bf16[2,32,64], index: 6, kind: input, shape index: {}]   ;;  %s2703_s7 = inlined_call_operand.vmem [shape: bf16[2,64,32], index: 7, kind: input, shape index: {}]   ;;  %s2704_s8 = inlined_call_operand.vmem [shape: f32[2,8,128], index: 8, kind: input, shape index: {}]   ;;  %s2705_s9 = inlined_call_operand.vmem [shape: bf16[32,128], index: 9, kind: input, shape index: {}]   ;;  %s2706_s10 = inlined_call_operand.vmem [shape: f32[5,128], index: 10, kind: input, shape index: {}]   ;;  %s2707_s11 = inlined_call_operand.vmem [shape: f32[1,128], index: 11, kind: input, shape index: {}]   ;;  %s2708_s12 = inlined_call_operand.hbm [shape: f32[2,128], index: 12, kind: output, shape index: {}]  }
   0x1   :  { %v43_v0 = vld [vmem:[%s2696_s0] sm:$0xff]  ;;  %2101 = vset.pattern.permute.xlu0 %v2220_v1  ;;  %1924 = vmatprep.subr.bf16.mxu0 %v2221_v2  ;;  %v44_v4 = vld [vmem:[%s2696_s0 + $0x8] sm:$0xff]  ;;  %v2104_v6 = vld [vmem:[%s2698_s2 + $0x10] sm:$0xff]  }
   0x2   :  { %v2102_v3 = vld [vmem:[%s2698_s2] sm:$0xff]   ;;  %48 = vperm.xlu0 %2101, %v43_v0   ;;  %1944 = vmatprep.subr.bf16.mxu1 %v2221_v2  ;;  %v2103_v5 = vld [vmem:[%s2698_s2 + $0x8] sm:$0xff]   ;;  %v2105_v7 = vld [vmem:[%s2698_s2 + $0x18] sm:$0xff]  }
   0x3   :  { %1925 = vmatpush3.bf16.msra.mxu0 %v2102_v3  ;;  %1940 = vmatprep.mubr.msk.bf16.mxu0 %vm2222_vm0, %v2221_v2  ;;  %v2106_v8 = vld [vmem:[%s2698_s2 + $0x20] sm:$0xff]   ;;  %v2107_v9 = vld [vmem:[%s2698_s2 + $0x28] sm:$0xff]   ;;  %v2108_v10 = vld [vmem:[%s2698_s2 + $0x30] sm:$0xff]  }
   0x4   :  { %1926 = vmatprep.subr.bf16.mxu0 %v2221_v2  ;;  %1948 = vmatprep.mubr.msk.bf16.mxu1 %vm2222_vm0, %v2221_v2 }
   0x6   :  { %51 = vperm.xlu0 %2101, %v44_v4  }
   0x7   :  { %1927 = vmatpush3.bf16.msra.mxu0 %v2103_v5 }
   0x8   :  { %1928 = vmatprep.subr.bf16.mxu0 %v2221_v2 }
   0xb   :  { %1929 = vmatpush3.bf16.msra.mxu0 %v2104_v6 }
   0xc   :  { %1930 = vmatprep.subr.bf16.mxu0 %v2221_v2 }
   0xf   :  { %1931 = vmatpush3.bf16.msra.mxu0 %v2105_v7 }
  0x10   :  { %1932 = vmatprep.subr.bf16.mxu0 %v2221_v2 }
  0x13   :  { %1933 = vmatpush3.bf16.msra.mxu0 %v2106_v8 }
  0x14   :  { %1934 = vmatprep.subr.bf16.mxu0 %v2221_v2 }
  0x17   :  { %1935 = vmatpush3.bf16.msra.mxu0 %v2107_v9 }
  0x18   :  { %1936 = vmatprep.subr.bf16.mxu0 %v2221_v2 }
  0x19   :  { %17 = vsyncpa [#allocation3], 0  ;;  %v2109_v11 = vld [vmem:[%s2698_s2 + $0x38] sm:$0xff]   ;;  %v45_v12 = vlaneseq  ;;  %v2223_v16 = vmov 1.0|1.0   ;;  %v74_v17 = vld [vmem:[%s2699_s3] sm:$0xff] }
  0x1a   :  { %vm165_vm4 = vcmask 261120   ;;  %v2110_v36 = vld [vmem:[%s2700_s4] sm:$0xff]   ;;  %v2111_v37 = vld [vmem:[%s2700_s4 + $0x8] sm:$0xff]   ;;  %v75_v46 = vld [vmem:[%s2699_s3 + $0x10] sm:$0x3]  ;;  %s2224_s30 = smov 96  }
  0x1b   :  { %1937 = vmatpush3.bf16.msra.mxu0 %v2108_v10  ;;  %v2339_v14 = vand.u32 127, %v45_v12  ;;  %1945 = vmatpush3.bf16.msra.mxu1 %v2110_v36  ;;  %v2360_v44 = vshrl.u32 %v45_v12, 7  ;;  %v2385_v59 = vld [vmem:[%s2704_s8] sm:$0xff]  ;;  %vm277_vm5 = vcmask 130048   ;;  %v2407_v12 = vld [vmem:[%s2697_s1 + $0x8] sm:$0xff]  ;;  %s2225_s16 = smov 80  }
  0x1c   :  { %1938 = vmatprep.subr.bf16.mxu0 %v2221_v2  ;;  %1946 = vmatprep.subr.bf16.mxu1 %v2221_v2  ;;  %v2402_v8 = vld [vmem:[%s2697_s1] sm:$0xff]  ;;  %s2226_s1 = smov 64   ;;  %s2227_s17 = smov 112   ;;  %vm797_vm6 = vcmask 523264   ;;  %vm1677_vm8 = vcmask 33792   ;;  %vm1694_vm9 = vcmask 1044480  }
  0x1d   :  { %v2363_v45 = vsub.s32 0, %v2360_v44  ;;  %v2370_v50 = vsub.s32 1, %v2360_v44  ;;  %s2228_s18 = smov 48   ;;  %vm1690_vm10 = vcmask 39936  }
  0x1f   :  { %1939 = vmatpush3.bf16.msra.mxu0 %v2109_v11  ;;  %1947 = vmatpush3.bf16.msra.mxu1 %v2111_v37  ;;  %v196_v49 = vrot.slane %v75_v46, %v2363_v45  ;;  %v202_v54 = vrot.slane %v75_v46, %v2370_v50  ;;  %v216_v60 = vrot.slane %v2385_v59, %v2363_v45 }
  0x20   :  { %1970 = vmatprep.subr.bf16.mxu0 %v2221_v2  ;;  %1952 = vmatprep.subr.bf16.mxu1 %v2221_v2 }
  0x81   :  { %v49_v13 = vpop.permute.xlu0 %48 }
  0x82   :  { %vm53_vm1 = vcmp.eq.s32.totalorder %v2339_v14, %v49_v13 }
  0x85   :  { %v52_v15 = vpop.permute.xlu0 %51 }
  0x86   :  { %vm54_vm2 = vcmp.eq.s32.totalorder %v2339_v14, %v52_v15 }
  0x87   :  { %vm1792_vm3 = vmpackc.low %vm54_vm2, %vm53_vm1 }
  0x88   :  { %1941 = vmatmul.mubr.msk.bf16.vlgmr.msra.gmra.mrb[0].mxu0 %vm1792_vm3, %v2223_v16 }
  0x89   :  { %1972 = vmatprep.mubr.msk.bf16.mxu0 %vm2222_vm0, %v2221_v2 }
 0x15b   :  { %v158_v18 = vpop.f32.mrb[0].mxu0 }
 0x15c   :  { %v159_v19 = vadd.f32 %v158_v18, %v74_v17  ;;  %v1942_v20 = vpop.f32.mrb[1].mxu0 }
 0x15d   :  { %v161_v21 = vpop.f32.mrb[2].mxu0 }
 0x15e   :  { %v162_v22 = vadd.f32 %v161_v21, %v74_v17  ;;  %v1943_v23 = vpop.f32.mrb[3].mxu0  ;;  %v166_v24 = vsel %vm165_vm4, %v159_v19, 0.0 }
 0x15f   :  { %167 = vadd.xlane.f32.xlu1 %v166_v24 }
 0x160   :  { %v169_v25 = vsel %vm165_vm4, %v162_v22, 0.0 }
 0x163   :  { %170 = vadd.xlane.f32.xlu1 %v169_v25 }
 0x1ec   :  { %v168_v26 = vpop.xlane.xlu1 %167 }
 0x1ed   :  { %v173_v27 = vmul.f32 0.03125, %v168_v26 }
 0x1ef   :  { %v175_v28 = vsub.f32 %v159_v19, %v173_v27 }
 0x1f0   :  { %v171_v29 = vpop.xlane.xlu1 %170 }
 0x1f1   :  { %v174_v30 = vmul.f32 0.03125, %v171_v29  ;;  %v177_v31 = vmul.f32 %v175_v28, %v175_v28 }
 0x1f3   :  { %v176_v32 = vsub.f32 %v162_v22, %v174_v30  ;;  %v179_v33 = vsel %vm165_vm4, %v177_v31, 0.0 }
 0x1f4   :  { %180 = vadd.xlane.f32.xlu0 %v179_v33 }
 0x1f5   :  { %v178_v34 = vmul.f32 %v176_v32, %v176_v32 }
 0x1f7   :  { %v182_v35 = vsel %vm165_vm4, %v178_v34, 0.0 }
 0x1f8   :  { %183 = vadd.xlane.f32.xlu1 %v182_v35 }
 0x281   :  { %v181_v38 = vpop.xlane.xlu0 %180 }
 0x282   :  { %v185_v39 = vmul.f32 0.03125, %v181_v38 }
 0x284   :  { %v187_v40 = vadd.f32 1e-12, %v185_v39 }
 0x285   :  { %v184_v41 = vpop.xlane.xlu1 %183 }
 0x286   :  { %2132 = vrsqrt.f32 %v187_v40  ;;  %v186_v42 = vmul.f32 0.03125, %v184_v41 }
 0x288   :  { %v188_v43 = vadd.f32 1e-12, %v186_v42 }
 0x28a   :  { %2134 = vrsqrt.f32 %v188_v43 }
 0x290   :  { %v2133_v47 = vpop.eup %2132 }
 0x291   :  { %v191_v48 = vmul.f32 %v2133_v47, %v175_v28 }
 0x293   :  { %v197_v53 = vmul.f32 %v196_v49, %v191_v48 }
 0x294   :  { %v2135_v51 = vpop.eup %2134 }
 0x295   :  { %v192_v52 = vmul.f32 %v2135_v51, %v176_v32  ;;  %v2373_v56 = vadd.f32 %v202_v54, %v197_v53 }
 0x297   :  { %v198_v55 = vmul.f32 %v196_v49, %v192_v52 }
 0x299   :  { %v2375_v57 = vadd.f32 %v202_v54, %v198_v55 }
 0x29b   :  { %v208_v58 = vpack.c.bf16 %v2375_v57, %v2373_v56 }
 0x29d   :  { %1949 = vmatmul.mubr.msk.bf16.vlgmr.msra.gmra.mrb[0].mxu1 %vm165_vm4, %v208_v58 }
 0x29e   :  { %1954 = vmatprep.mubr.msk.bf16.mxu1 %vm2222_vm0, %v2221_v2 }
 0x370   :  { %v266_v61 = vpop.f32.mrb[0].mxu1 }
 0x371   :  { %v1950_v62 = vpop.f32.mrb[1].mxu1  ;;  %v267_v0 = vadd.f32 %v266_v61, %v216_v60 }
 0x372   :  { %v269_v63 = vpop.f32.mrb[2].mxu1 }
 0x373   :  { %v270_v1 = vadd.f32 %v269_v63, %v216_v60  ;;  %v1951_v3 = vpop.f32.mrb[3].mxu1 }
 0x375   :  { %v2389_v4 = vpack.c.bf16 %v270_v1, %v267_v0 }
 0x377   :  { %275 = vrot.lane.b32.xlu1 %v2389_v4, %s2224_s30 }
 0x3e9   :  { %v276_v5 = vpop.permute.xlu1 %275 }
 0x3ea   :  { %v282_v6 = vsel %vm277_vm5, %v276_v5, 0 }
 0x3eb   :  { %1953 = vmatpush3.bf16.xpose.msra.mxu1 %v282_v6 }
 0x3ec   :  { %1958 = vmatprep.subr.bf16.mxu1 %v2221_v2 }
 0x3f2   :  { %1955 = vmatmul.mubr.msk.bf16.vlgmr.msra.gmra.mrb[4].mxu1 %vm277_vm5, %v2389_v4 }
 0x3f3   :  { %1960 = vmatprep.mubr.msk.bf16.mxu1 %vm2222_vm0, %v2221_v2 }
 0x4c5   :  { %v318_v7 = vpop.f32.mrb[4].mxu1 }
 0x4c6   :  { %v325_v9 = vmul.f32 0.25, %v318_v7  ;;  %v1956_v10 = vpop.f32.mrb[5].mxu1 }
 0x4c7   :  { %v321_v11 = vpop.f32.mrb[6].mxu1 }
 0x4c8   :  { %v326_v13 = vmul.f32 0.25, %v321_v11  ;;  %v1957_v15 = vpop.f32.mrb[7].mxu1  ;;  %v327_v16 = vadd.f32 %v325_v9, %v2402_v8 }
 0x4ca   :  { %v329_v17 = vsel %vm277_vm5, %v327_v16, -inf  ;;  %v328_v18 = vadd.f32 %v326_v13, %v2407_v12 }
 0x4cb   :  { %330 = vmax.xlane.f32.xlu1 %v329_v17 }
 0x4cc   :  { %v332_v19 = vsel %vm277_vm5, %v328_v18, -inf }
 0x4cd   :  { %333 = vmax.xlane.f32.xlu0 %v332_v19 }
 0x4dc   :  { %404 = vrot.lane.b32.xlu1 %v2389_v4, %s2225_s16 }
 0x558   :  { %v331_v20 = vpop.xlane.xlu1 %330 }
 0x559   :  { %v335_v21 = vsub.f32 %v327_v16, %v331_v20  ;;  %v2112_v20 = vld [vmem:[%s2701_s5] sm:$0xff]  }
 0x55a   :  { %v334_v22 = vpop.xlane.xlu0 %333 }
 0x55b   :  { %v337_v23 = vmul.f32 1.442695, %v335_v21  ;;  %v336_v24 = vsub.f32 %v328_v18, %v334_v22 }
 0x55c   :  { %v405_v37 = vpop.permute.xlu1 %404 }
 0x55d   :  { %2136 = vpow2.f32 %v337_v23  ;;  %v339_v25 = vmul.f32 1.442695, %v336_v24  ;;  %v410_v39 = vsel %vm277_vm5, %v405_v37, 0 }
 0x55f   :  { %2138 = vpow2.f32 %v339_v25 }
 0x567   :  { %v2137_v26 = vpop.eup %2136 }
 0x568   :  { %v341_v27 = vsel %vm277_vm5, %v2137_v26, 0.0 }
 0x569   :  { %v2139_v28 = vpop.eup %2138  ;;  %342 = vadd.xlane.f32.xlu0 %v341_v27 }
 0x56a   :  { %v344_v29 = vsel %vm277_vm5, %v2139_v28, 0.0 }
 0x56d   :  { %345 = vadd.xlane.f32.xlu0 %v344_v29 }
 0x583   :  { %352 = vrot.lane.b32.xlu0 %v2389_v4, %s2226_s1 }
 0x587   :  { %402 = vrot.lane.b32.xlu0 %v2389_v4, %s2227_s17 }
 0x5f6   :  { %v343_v30 = vpop.xlane.xlu0 %342 }
 0x5f7   :  { %2140 = vrcp.f32 %v343_v30 }
 0x5fa   :  { %v346_v31 = vpop.xlane.xlu0 %345 }
 0x5fb   :  { %2142 = vrcp.f32 %v346_v31  ;;  %v633_v31 = vsub.s32 2, %v2360_v44 }
 0x5fe   :  { %v353_v32 = vpop.permute.xlu0 %352 }
 0x5ff   :  { %1959 = vmatpush3.bf16.msra.mxu1 %v353_v32  ;;  %v634_v32 = vrot.slane %v2385_v59, %v633_v31 }
 0x600   :  { %1964 = vmatprep.subr.bf16.mxu1 %v2221_v2 }
 0x601   :  { %v2141_v33 = vpop.eup %2140 }
 0x602   :  { %v349_v35 = vmul.f32 %v2141_v33, %v2137_v26  ;;  %v403_v40 = vpop.permute.xlu0 %402 }
 0x605   :  { %v2143_v34 = vpop.eup %2142 }
 0x606   :  { %v350_v36 = vmul.f32 %v2143_v34, %v2139_v28 }
 0x608   :  { %v351_v38 = vpack.c.bf16 %v350_v36, %v349_v35 }
 0x60a   :  { %1961 = vmatmul.mubr.msk.bf16.vlgmr.msra.gmra.mrb[8].mxu1 %vm277_vm5, %v351_v38 }
 0x60b   :  { %1965 = vmatpush3.bf16.xpose.msra.mxu1 %v410_v39  ;;  %1966 = vmatprep.mubr.msk.bf16.mxu1 %vm2222_vm0, %v2221_v2 }
 0x60c   :  { %1976 = vmatprep.subr.bf16.mxu1 %v2221_v2 }
 0x612   :  { %1967 = vmatmul.mubr.msk.bf16.vlgmr.msra.gmra.mrb[12].mxu1 %vm277_vm5, %v403_v40 }
 0x613   :  { %1978 = vmatprep.mubr.msk.bf16.mxu1 %vm2222_vm0, %v2221_v2 }
 0x6dd   :  { %v392_v41 = vpop.f32.mrb[8].mxu1 }
 0x6de   :  { %v1962_v42 = vpop.f32.mrb[9].mxu1 }
 0x6df   :  { %v395_v43 = vpop.f32.mrb[10].mxu1 }
 0x6e0   :  { %v399_v46 = vpack.c.bf16 %v395_v43, %v392_v41  ;;  %v1963_v47 = vpop.f32.mrb[11].mxu1 }
 0x6e5   :  { %v446_v48 = vpop.f32.mrb[12].mxu1 }
 0x6e6   :  { %v453_v49 = vmul.f32 0.25, %v446_v48  ;;  %v1968_v51 = vpop.f32.mrb[13].mxu1 }
 0x6e7   :  { %v449_v52 = vpop.f32.mrb[14].mxu1 }
 0x6e8   :  { %v454_v53 = vmul.f32 0.25, %v449_v52  ;;  %v1969_v54 = vpop.f32.mrb[15].mxu1  ;;  %v455_v55 = vadd.f32 %v453_v49, %v2402_v8 }
 0x6ea   :  { %v457_v58 = vsel %vm277_vm5, %v455_v55, -inf  ;;  %v456_v60 = vadd.f32 %v454_v53, %v2407_v12 }
 0x6eb   :  { %458 = vmax.xlane.f32.xlu0 %v457_v58 }
 0x6ec   :  { %v460_v61 = vsel %vm277_vm5, %v456_v60, -inf }
 0x6ed   :  { %461 = vmax.xlane.f32.xlu1 %v460_v61 }
 0x778   :  { %v459_v62 = vpop.xlane.xlu0 %458 }
 0x779   :  { %v463_v63 = vsub.f32 %v455_v55, %v459_v62 }
 0x77a   :  { %v462_v0 = vpop.xlane.xlu1 %461 }
 0x77b   :  { %v465_v1 = vmul.f32 1.442695, %v463_v63  ;;  %v464_v3 = vsub.f32 %v456_v60, %v462_v0  ;;  %v2115_v60 = vld [vmem:[%s2702_s6 + $0x8] sm:$0xff]  }
 0x77d   :  { %2144 = vpow2.f32 %v465_v1  ;;  %v467_v5 = vmul.f32 1.442695, %v464_v3 }
 0x77f   :  { %2146 = vpow2.f32 %v467_v5  ;;  %v667_v5 = vsub.s32 3, %v2360_v44 }
 0x787   :  { %v2145_v6 = vpop.eup %2144 }
 0x788   :  { %v469_v7 = vsel %vm277_vm5, %v2145_v6, 0.0 }
 0x789   :  { %v2147_v9 = vpop.eup %2146  ;;  %470 = vadd.xlane.f32.xlu0 %v469_v7  ;;  %v668_v7 = vrot.slane %v2385_v59, %v667_v5 }
 0x78a   :  { %v472_v10 = vsel %vm277_vm5, %v2147_v9, 0.0 }
 0x78d   :  { %473 = vadd.xlane.f32.xlu0 %v472_v10  ;;  %v673_v10 = vsub.s32 4, %v2360_v44 }
 0x7a3   :  { %480 = vrot.lane.b32.xlu0 %v2389_v4, %s2228_s18  ;;  %v2113_v4 = vld [vmem:[%s2701_s5 + $0x8] sm:$0xff]  }
 0x7a4   :  { %1977 = vmatpush3.bf16.msra.mxu1 %v2113_v4  ;;  %v2117_v4 = vld [vmem:[%s2703_s7 + $0x8] sm:$0xff]  }
 0x7a5   :  { %1988 = vmatprep.subr.bf16.mxu1 %v2221_v2 }
 0x816   :  { %v471_v11 = vpop.xlane.xlu0 %470 }
 0x817   :  { %2148 = vrcp.f32 %v471_v11 }
 0x81a   :  { %v474_v13 = vpop.xlane.xlu0 %473 }
 0x81b   :  { %2150 = vrcp.f32 %v474_v13 }
 0x81e   :  { %v481_v15 = vpop.permute.xlu0 %480 }
 0x81f   :  { %1971 = vmatpush3.bf16.msra.mxu0 %v481_v15 }
 0x820   :  { %1982 = vmatprep.subr.bf16.mxu0 %v2221_v2 }
 0x821   :  { %v2149_v16 = vpop.eup %2148 }
 0x822   :  { %v477_v18 = vmul.f32 %v2149_v16, %v2145_v6  ;;  %v674_v16 = vrot.slane %v2385_v59, %v673_v10 }
 0x825   :  { %v2151_v17 = vpop.eup %2150 }
 0x826   :  { %v478_v19 = vmul.f32 %v2151_v17, %v2147_v9 }
 0x828   :  { %v479_v21 = vpack.c.bf16 %v478_v19, %v477_v18 }
 0x82a   :  { %1973 = vmatmul.mubr.msk.bf16.vlgmr.msra.gmra.mrb[4].mxu0 %vm277_vm5, %v479_v21  ;;  %v2116_v21 = vld [vmem:[%s2703_s7] sm:$0xff]  }
 0x82b   :  { %1983 = vmatpush3.bf16.msra.mxu0 %v2112_v20  ;;  %1984 = vmatprep.mubr.msk.bf16.mxu0 %vm2222_vm0, %v2221_v2 }
 0x82c   :  { %1996 = vmatprep.subr.bf16.mxu0 %v2221_v2 }
 0x832   :  { %1985 = vmatmul.mubr.msk.bf16.vlgmr.msra.gmra.mrb[8].mxu0 %vm277_vm5, %v399_v46 }
 0x833   :  { %2004 = vmatprep.mubr.msk.bf16.mxu0 %vm2222_vm0, %v2221_v2  ;;  %1997 = vmatpush3.bf16.msra.mxu0 %v2116_v21  ;;  %v2121_v21 = vld [vmem:[%s2700_s4 + $0x18] sm:$0xff]  }
 0x834   :  { %1998 = vmatprep.subr.bf16.mxu0 %v2221_v2 }
 0x837   :  { %1999 = vmatpush3.bf16.msra.mxu0 %v2117_v4 }
 0x838   :  { %2000 = vmatprep.subr.bf16.mxu0 %v2221_v2 }
 0x8fd   :  { %v520_v22 = vpop.f32.mrb[4].mxu0 }
 0x8fe   :  { %v1974_v23 = vpop.f32.mrb[5].mxu0 }
 0x8ff   :  { %v523_v24 = vpop.f32.mrb[6].mxu0  ;;  %v2119_v23 = vld [vmem:[%s2703_s7 + $0x18] sm:$0xff]  }
 0x900   :  { %v527_v25 = vpack.c.bf16 %v523_v24, %v520_v22  ;;  %v1975_v26 = vpop.f32.mrb[7].mxu0  ;;  %v2118_v22 = vld [vmem:[%s2703_s7 + $0x10] sm:$0xff]   ;;  %v685_v24 = vrot.slane %v2385_v59, %v2370_v50 }
 0x901   :  { %2001 = vmatpush3.bf16.msra.mxu0 %v2118_v22 }
 0x902   :  { %1979 = vmatmul.mubr.msk.bf16.vlgmr.msra.gmra.mrb[16].mxu1 %vm277_vm5, %v527_v25  ;;  %2002 = vmatprep.subr.bf16.mxu0 %v2221_v2 }
 0x903   :  { %1992 = vmatprep.mubr.msk.bf16.mxu1 %vm2222_vm0, %v2221_v2 }
 0x905   :  { %v624_v27 = vpop.f32.mrb[8].mxu0  ;;  %2003 = vmatpush3.bf16.msra.mxu0 %v2119_v23 }
 0x906   :  { %v1986_v28 = vpop.f32.mrb[9].mxu0  ;;  %2022 = vmatprep.subr.bf16.mxu0 %v2221_v2 }
 0x907   :  { %v627_v29 = vpop.f32.mrb[10].mxu0 }
 0x908   :  { %v1987_v30 = vpop.f32.mrb[11].mxu0 }
 0x9d5   :  { %v574_v33 = vpop.f32.mrb[16].mxu1 }
 0x9d6   :  { %v625_v34 = vadd.f32 %v624_v27, %v574_v33  ;;  %v1980_v35 = vpop.f32.mrb[17].mxu1 }
 0x9d7   :  { %v577_v36 = vpop.f32.mrb[18].mxu1 }
 0x9d8   :  { %v635_v37 = vadd.f32 %v634_v32, %v625_v34  ;;  %v628_v38 = vadd.f32 %v627_v29, %v577_v36  ;;  %v1981_v39 = vpop.f32.mrb[19].mxu1 }
 0x9da   :  { %v636_v40 = vadd.f32 %v634_v32, %v628_v38  ;;  %v637_v41 = vadd.f32 %v635_v37, %v2373_v56 }
 0x9dc   :  { %v639_v42 = vsel %vm165_vm4, %v637_v41, 0.0  ;;  %v638_v43 = vadd.f32 %v636_v40, %v2375_v57  ;;  %v2114_v57 = vld [vmem:[%s2702_s6] sm:$0xff]  }
 0x9dd   :  { %640 = vadd.xlane.f32.xlu1 %v639_v42  ;;  %1989 = vmatpush3.bf16.msra.mxu1 %v2114_v57 }
 0x9de   :  { %v642_v46 = vsel %vm165_vm4, %v638_v43, 0.0  ;;  %1990 = vmatprep.subr.bf16.mxu1 %v2221_v2 }
 0x9e1   :  { %643 = vadd.xlane.f32.xlu1 %v642_v46  ;;  %1991 = vmatpush3.bf16.msra.mxu1 %v2115_v60 }
 0x9e2   :  { %2008 = vmatprep.subr.bf16.mxu1 %v2221_v2 }
 0xa6a   :  { %v641_v47 = vpop.xlane.xlu1 %640 }
 0xa6b   :  { %v645_v48 = vmul.f32 0.03125, %v641_v47 }
 0xa6d   :  { %v647_v49 = vsub.f32 %v637_v41, %v645_v48 }
 0xa6e   :  { %v644_v51 = vpop.xlane.xlu1 %643 }
 0xa6f   :  { %v646_v52 = vmul.f32 0.03125, %v644_v51  ;;  %v649_v53 = vmul.f32 %v647_v49, %v647_v49 }
 0xa71   :  { %v648_v54 = vsub.f32 %v638_v43, %v646_v52  ;;  %v651_v55 = vsel %vm165_vm4, %v649_v53, 0.0 }
 0xa72   :  { %652 = vadd.xlane.f32.xlu1 %v651_v55 }
 0xa73   :  { %v650_v58 = vmul.f32 %v648_v54, %v648_v54 }
 0xa75   :  { %v654_v56 = vsel %vm165_vm4, %v650_v58, 0.0 }
 0xa76   :  { %655 = vadd.xlane.f32.xlu1 %v654_v56 }
 0xaff   :  { %v653_v61 = vpop.xlane.xlu1 %652 }
 0xb00   :  { %v657_v62 = vmul.f32 0.03125, %v653_v61 }
 0xb02   :  { %v659_v63 = vadd.f32 1e-12, %v657_v62 }
 0xb03   :  { %v656_v0 = vpop.xlane.xlu1 %655 }
 0xb04   :  { %2152 = vrsqrt.f32 %v659_v63  ;;  %v658_v1 = vmul.f32 0.03125, %v656_v0 }
 0xb06   :  { %v660_v3 = vadd.f32 1e-12, %v658_v1 }
 0xb08   :  { %2154 = vrsqrt.f32 %v660_v3 }
 0xb0e   :  { %v2153_v6 = vpop.eup %2152 }
 0xb0f   :  { %v663_v9 = vmul.f32 %v2153_v6, %v647_v49 }
 0xb11   :  { %v669_v13 = vmul.f32 %v668_v7, %v663_v9 }
 0xb12   :  { %v2155_v11 = vpop.eup %2154 }
 0xb13   :  { %v664_v15 = vmul.f32 %v2155_v11, %v648_v54  ;;  %v675_v18 = vadd.f32 %v674_v16, %v669_v13  ;;  %v771_v54 = vsub.s32 5, %v2360_v44 }
 0xb15   :  { %v670_v17 = vmul.f32 %v668_v7, %v664_v15  ;;  %v772_v55 = vrot.slane %v2385_v59, %v771_v54 }
 0xb17   :  { %v676_v19 = vadd.f32 %v674_v16, %v670_v17 }
 0xb19   :  { %v677_v20 = vpack.c.bf16 %v676_v19, %v675_v18 }
 0xb1b   :  { %1993 = vmatmul.mubr.msk.bf16.vlgmr.msra.gmra.mrb[20].mxu1 %vm165_vm4, %v677_v20 }
 0xb1c   :  { %2012 = vmatprep.mubr.msk.bf16.mxu1 %vm2222_vm0, %v2221_v2 }
 0xbee   :  { %v735_v25 = vpop.f32.mrb[20].mxu1 }
 0xbef   :  { %v736_v26 = vadd.f32 %v735_v25, %v685_v24  ;;  %v1994_v27 = vpop.f32.mrb[21].mxu1 }
 0xbf0   :  { %v738_v28 = vpop.f32.mrb[22].mxu1  ;;  %v872_v27 = vsub.s32 6, %v2360_v44 }
 0xbf1   :  { %v744_v29 = vmul.f32 0.044715, %v736_v26  ;;  %v739_v30 = vadd.f32 %v738_v28, %v685_v24  ;;  %v1995_v32 = vpop.f32.mrb[23].mxu1  ;;  %v742_v47 = vmul.f32 0.5, %v736_v26 }
 0xbf2   :  { %v878_v32 = vsub.s32 7, %v2360_v44 }
 0xbf3   :  { %v746_v33 = vmul.f32 %v744_v29, %v736_v26  ;;  %v745_v34 = vmul.f32 0.044715, %v739_v30  ;;  %v743_v48 = vmul.f32 0.5, %v739_v30  ;;  %v873_v29 = vrot.slane %v2385_v59, %v872_v27 }
 0xbf5   :  { %v748_v35 = vmul.f32 %v746_v33, %v736_v26  ;;  %v747_v36 = vmul.f32 %v745_v34, %v739_v30 }
 0xbf7   :  { %v750_v37 = vadd.f32 %v748_v35, %v736_v26  ;;  %v749_v38 = vmul.f32 %v747_v36, %v739_v30  ;;  %v879_v36 = vrot.slane %v2385_v59, %v878_v32 }
 0xbf9   :  { %v752_v39 = vmul.f32 0.7978846, %v750_v37  ;;  %v751_v40 = vadd.f32 %v749_v38, %v739_v30 }
 0xbfb   :  { %2156 = vtanh.f32 %v752_v39  ;;  %v753_v41 = vmul.f32 0.7978846, %v751_v40 }
 0xbfd   :  { %2158 = vtanh.f32 %v753_v41  ;;  %v2542_v41 = vld [vmem:[%s2704_s8 + $0x8] sm:$0xff] }
 0xbfe   :  { %v893_v59 = vrot.slane %v2542_v41, %v2363_v45 }
 0xc05   :  { %v2157_v42 = vpop.eup %2156 }
 0xc06   :  { %v756_v43 = vadd.f32 1.0, %v2157_v42 }
 0xc07   :  { %v2159_v46 = vpop.eup %2158 }
 0xc08   :  { %v757_v49 = vadd.f32 1.0, %v2159_v46  ;;  %v758_v51 = vmul.f32 %v756_v43, %v742_v47 }
 0xc0a   :  { %v759_v52 = vmul.f32 %v757_v49, %v743_v48 }
 0xc0c   :  { %v760_v53 = vpack.c.bf16 %v759_v52, %v758_v51 }
 0xc0e   :  { %2005 = vmatmul.mubr.msk.bf16.vlgmr.msra.gmra.mrb[12].mxu0 %vm797_vm6, %v760_v53 }
 0xc0f   :  { %2024 = vmatprep.mubr.msk.bf16.mxu0 %vm2222_vm0, %v2221_v2 }
 0xce1   :  { %v835_v58 = vpop.f32.mrb[12].mxu0 }
 0xce2   :  { %v836_v56 = vadd.f32 %v835_v58, %v772_v55  ;;  %v2006_v57 = vpop.f32.mrb[13].mxu0 }
 0xce3   :  { %v838_v60 = vpop.f32.mrb[14].mxu0 }
 0xce4   :  { %v839_v61 = vadd.f32 %v838_v60, %v772_v55  ;;  %v2007_v62 = vpop.f32.mrb[15].mxu0  ;;  %v842_v63 = vadd.f32 %v836_v56, %v675_v18 }
 0xce6   :  { %v844_v0 = vsel %vm165_vm4, %v842_v63, 0.0  ;;  %v843_v1 = vadd.f32 %v839_v61, %v676_v19  ;;  %v2120_v19 = vld [vmem:[%s2700_s4 + $0x10] sm:$0xff]  }
 0xce7   :  { %845 = vadd.xlane.f32.xlu1 %v844_v0  ;;  %2009 = vmatpush3.bf16.msra.mxu1 %v2120_v19 }
 0xce8   :  { %v847_v3 = vsel %vm165_vm4, %v843_v1, 0.0  ;;  %2010 = vmatprep.subr.bf16.mxu1 %v2221_v2 }
 0xce9   :  { %848 = vadd.xlane.f32.xlu0 %v847_v3 }
 0xceb   :  { %2011 = vmatpush3.bf16.msra.mxu1 %v2121_v21 }
 0xcec   :  { %2016 = vmatprep.subr.bf16.mxu1 %v2221_v2 }
 0xd74   :  { %v846_v6 = vpop.xlane.xlu1 %845 }
 0xd75   :  { %v850_v7 = vmul.f32 0.03125, %v846_v6 }
 0xd76   :  { %v849_v9 = vpop.xlane.xlu0 %848 }
 0xd77   :  { %v852_v11 = vsub.f32 %v842_v63, %v850_v7  ;;  %v851_v13 = vmul.f32 0.03125, %v849_v9 }
 0xd79   :  { %v853_v15 = vsub.f32 %v843_v1, %v851_v13  ;;  %v854_v16 = vmul.f32 %v852_v11, %v852_v11 }
 0xd7b   :  { %v856_v17 = vsel %vm165_vm4, %v854_v16, 0.0  ;;  %v855_v20 = vmul.f32 %v853_v15, %v853_v15 }
 0xd7c   :  { %857 = vadd.xlane.f32.xlu1 %v856_v17 }
 0xd7d   :  { %v859_v18 = vsel %vm165_vm4, %v855_v20, 0.0 }
 0xd80   :  { %860 = vadd.xlane.f32.xlu1 %v859_v18 }
 0xe09   :  { %v858_v4 = vpop.xlane.xlu1 %857 }
 0xe0a   :  { %v862_v22 = vmul.f32 0.03125, %v858_v4 }
 0xe0c   :  { %v864_v23 = vadd.f32 1e-12, %v862_v22 }
 0xe0d   :  { %v861_v24 = vpop.xlane.xlu1 %860 }
 0xe0e   :  { %2160 = vrsqrt.f32 %v864_v23  ;;  %v863_v25 = vmul.f32 0.03125, %v861_v24 }
 0xe10   :  { %v865_v26 = vadd.f32 1e-12, %v863_v25 }
 0xe12   :  { %2162 = vrsqrt.f32 %v865_v26 }
 0xe18   :  { %v2161_v28 = vpop.eup %2160 }
 0xe19   :  { %v868_v30 = vmul.f32 %v2161_v28, %v852_v11 }
 0xe1b   :  { %v874_v34 = vmul.f32 %v873_v29, %v868_v30 }
 0xe1c   :  { %v2163_v33 = vpop.eup %2162 }
 0xe1d   :  { %v869_v35 = vmul.f32 %v2163_v33, %v853_v15  ;;  %v2530_v38 = vadd.f32 %v879_v36, %v874_v34 }
 0xe1f   :  { %v875_v37 = vmul.f32 %v873_v29, %v869_v35 }
 0xe21   :  { %v2532_v39 = vadd.f32 %v879_v36, %v875_v37 }
 0xe23   :  { %v884_v40 = vpack.c.bf16 %v2532_v39, %v2530_v38 }
 0xe25   :  { %2013 = vmatmul.mubr.msk.bf16.vlgmr.msra.gmra.mrb[24].mxu1 %vm165_vm4, %v884_v40 }
 0xe26   :  { %2018 = vmatprep.mubr.msk.bf16.mxu1 %vm2222_vm0, %v2221_v2 }
 0xef8   :  { %v943_v42 = vpop.f32.mrb[24].mxu1 }
 0xef9   :  { %v2014_v43 = vpop.f32.mrb[25].mxu1  ;;  %v944_v47 = vadd.f32 %v943_v42, %v893_v59 }
 0xefa   :  { %v946_v46 = vpop.f32.mrb[26].mxu1 }
 0xefb   :  { %v947_v48 = vadd.f32 %v946_v46, %v893_v59  ;;  %v2015_v49 = vpop.f32.mrb[27].mxu1 }
 0xefd   :  { %v2546_v51 = vpack.c.bf16 %v947_v48, %v944_v47 }
 0xeff   :  { %952 = vrot.lane.b32.xlu1 %v2546_v51, %s2224_s30 }
 0xf03   :  { %1081 = vrot.lane.b32.xlu1 %v2546_v51, %s2225_s16 }
 0xf07   :  { %1079 = vrot.lane.b32.xlu1 %v2546_v51, %s2227_s17 }
 0xf71   :  { %v953_v52 = vpop.permute.xlu1 %952 }
 0xf72   :  { %v958_v45 = vsel %vm277_vm5, %v953_v52, 0 }
 0xf73   :  { %2017 = vmatpush3.bf16.xpose.msra.mxu1 %v958_v45 }
 0xf74   :  { %2028 = vmatprep.subr.bf16.mxu1 %v2221_v2 }
 0xf75   :  { %v1082_v53 = vpop.permute.xlu1 %1081 }
 0xf76   :  { %v1087_v55 = vsel %vm277_vm5, %v1082_v53, 0 }
 0xf79   :  { %v1080_v58 = vpop.permute.xlu1 %1079 }
 0xf7a   :  { %2019 = vmatmul.mubr.msk.bf16.vlgmr.msra.gmra.mrb[28].mxu1 %vm277_vm5, %v2546_v51 }
 0xf7b   :  { %2029 = vmatpush3.bf16.xpose.msra.mxu1 %v1087_v55  ;;  %2030 = vmatprep.mubr.msk.bf16.mxu1 %vm2222_vm0, %v2221_v2 }
 0xf7c   :  { %2040 = vmatprep.subr.bf16.mxu1 %v2221_v2 }
 0xf82   :  { %2031 = vmatmul.mubr.msk.bf16.vlgmr.msra.gmra.mrb[32].mxu1 %vm277_vm5, %v1080_v58 }
 0xf83   :  { %2042 = vmatprep.mubr.msk.bf16.mxu1 %vm2222_vm0, %v2221_v2 }
0x104d   :  { %v994_v56 = vpop.f32.mrb[28].mxu1 }
0x104e   :  { %v1001_v57 = vmul.f32 0.25, %v994_v56  ;;  %v2020_v60 = vpop.f32.mrb[29].mxu1 }
0x104f   :  { %v997_v61 = vpop.f32.mrb[30].mxu1 }
0x1050   :  { %v1002_v62 = vmul.f32 0.25, %v997_v61  ;;  %v2021_v63 = vpop.f32.mrb[31].mxu1  ;;  %v1003_v0 = vadd.f32 %v1001_v57, %v2402_v8 }
0x1051   :  { %v2122_v63 = vld [vmem:[%s2701_s5 + $0x10] sm:$0xff]  }
0x1052   :  { %v1005_v1 = vsel %vm277_vm5, %v1003_v0, -inf  ;;  %v1004_v3 = vadd.f32 %v1002_v62, %v2407_v12 }
0x1053   :  { %1006 = vmax.xlane.f32.xlu0 %v1005_v1 }
0x1054   :  { %v1008_v6 = vsel %vm277_vm5, %v1004_v3, -inf }
0x1055   :  { %1009 = vmax.xlane.f32.xlu1 %v1008_v6  ;;  %v1123_v7 = vpop.f32.mrb[32].mxu1 }
0x1056   :  { %v1130_v9 = vmul.f32 0.25, %v1123_v7  ;;  %v2032_v11 = vpop.f32.mrb[33].mxu1 }
0x1057   :  { %v1126_v13 = vpop.f32.mrb[34].mxu1 }
0x1058   :  { %v1131_v15 = vmul.f32 0.25, %v1126_v13  ;;  %v2033_v16 = vpop.f32.mrb[35].mxu1  ;;  %v1132_v17 = vadd.f32 %v1130_v9, %v2402_v8 }
0x105a   :  { %v1134_v20 = vsel %vm277_vm5, %v1132_v17, -inf  ;;  %v1133_v18 = vadd.f32 %v1131_v15, %v2407_v12 }
0x105b   :  { %1135 = vmax.xlane.f32.xlu0 %v1134_v20 }
0x105c   :  { %v1137_v19 = vsel %vm277_vm5, %v1133_v18, -inf }
0x105f   :  { %1138 = vmax.xlane.f32.xlu0 %v1137_v19 }
0x1066   :  { %1157 = vrot.lane.b32.xlu1 %v2546_v51, %s2228_s18 }
0x10e0   :  { %v1007_v21 = vpop.xlane.xlu0 %1006 }
0x10e1   :  { %v1011_v4 = vsub.f32 %v1003_v0, %v1007_v21  ;;  %v2123_v0 = vld [vmem:[%s2701_s5 + $0x18] sm:$0xff]  }
0x10e2   :  { %v1010_v22 = vpop.xlane.xlu1 %1009  ;;  %2041 = vmatpush3.bf16.msra.mxu1 %v2123_v0 }
0x10e3   :  { %v1013_v23 = vmul.f32 1.442695, %v1011_v4  ;;  %v1012_v24 = vsub.f32 %v1004_v3, %v1010_v22  ;;  %2052 = vmatprep.subr.bf16.mxu1 %v2221_v2  ;;  %v1311_v4 = vrot.slane %v2542_v41, %v633_v31 }
0x10e5   :  { %2164 = vpow2.f32 %v1013_v23  ;;  %v1015_v25 = vmul.f32 1.442695, %v1012_v24 }
0x10e6   :  { %v1158_v56 = vpop.permute.xlu1 %1157 }
0x10e7   :  { %2166 = vpow2.f32 %v1015_v25 }
0x10e8   :  { %v1136_v8 = vpop.xlane.xlu0 %1135 }
0x10e9   :  { %v1140_v26 = vsub.f32 %v1132_v17, %v1136_v8 }
0x10eb   :  { %v1142_v28 = vmul.f32 1.442695, %v1140_v26 }
0x10ec   :  { %v1139_v29 = vpop.xlane.xlu0 %1138 }
0x10ed   :  { %2168 = vpow2.f32 %v1142_v28  ;;  %v1141_v12 = vsub.f32 %v1133_v18, %v1139_v29 }
0x10ef   :  { %v2165_v30 = vpop.eup %2164  ;;  %v1144_v33 = vmul.f32 1.442695, %v1141_v12 }
0x10f0   :  { %v1017_v34 = vsel %vm277_vm5, %v2165_v30, 0.0 }
0x10f1   :  { %v2167_v35 = vpop.eup %2166  ;;  %2170 = vpow2.f32 %v1144_v33  ;;  %1018 = vadd.xlane.f32.xlu0 %v1017_v34 }
0x10f2   :  { %v1020_v36 = vsel %vm277_vm5, %v2167_v35, 0.0 }
0x10f5   :  { %1021 = vadd.xlane.f32.xlu0 %v1020_v36 }
0x10f7   :  { %v2169_v37 = vpop.eup %2168 }
0x10f8   :  { %v1146_v40 = vsel %vm277_vm5, %v2169_v37, 0.0 }
0x10f9   :  { %1147 = vadd.xlane.f32.xlu0 %v1146_v40 }
0x10fb   :  { %v2171_v59 = vpop.eup %2170 }
0x10fc   :  { %v1149_v42 = vsel %vm277_vm5, %v2171_v59, 0.0 }
0x10fd   :  { %1150 = vadd.xlane.f32.xlu0 %v1149_v42 }
0x1113   :  { %1028 = vrot.lane.b32.xlu0 %v2546_v51, %s2226_s1 }
0x117e   :  { %v1019_v43 = vpop.xlane.xlu0 %1018 }
0x117f   :  { %2172 = vrcp.f32 %v1019_v43 }
0x1182   :  { %v1022_v46 = vpop.xlane.xlu0 %1021 }
0x1183   :  { %2174 = vrcp.f32 %v1022_v46 }
0x1186   :  { %v1148_v47 = vpop.xlane.xlu0 %1147 }
0x1187   :  { %2176 = vrcp.f32 %v1148_v47  ;;  %v2125_v47 = vld [vmem:[%s2702_s6 + $0x18] sm:$0xff]  }
0x1189   :  { %v2173_v49 = vpop.eup %2172 }
0x118a   :  { %v1151_v48 = vpop.xlane.xlu0 %1150  ;;  %v1025_v45 = vmul.f32 %v2173_v49, %v2165_v30 }
0x118b   :  { %2178 = vrcp.f32 %v1151_v48 }
0x118d   :  { %v2175_v52 = vpop.eup %2174 }
0x118e   :  { %v1026_v53 = vmul.f32 %v2175_v52, %v2167_v35  ;;  %v1029_v55 = vpop.permute.xlu0 %1028 }
0x118f   :  { %2023 = vmatpush3.bf16.msra.mxu0 %v1029_v55 }
0x1190   :  { %v1027_v58 = vpack.c.bf16 %v1026_v53, %v1025_v45  ;;  %2034 = vmatprep.subr.bf16.mxu0 %v2221_v2 }
0x1191   :  { %v2177_v51 = vpop.eup %2176 }
0x1192   :  { %2025 = vmatmul.mubr.msk.bf16.vlgmr.msra.gmra.mrb[16].mxu0 %vm277_vm5, %v1027_v58  ;;  %v1154_v60 = vmul.f32 %v2177_v51, %v2169_v37 }
0x1193   :  { %2035 = vmatpush3.bf16.msra.mxu0 %v1158_v56  ;;  %2036 = vmatprep.mubr.msk.bf16.mxu0 %vm2222_vm0, %v2221_v2  ;;  %v1345_v56 = vrot.slane %v2542_v41, %v667_v5  ;;  %v2126_v5 = vld [vmem:[%s2703_s7 + $0x20] sm:$0xff]  }
0x1194   :  { %2046 = vmatprep.subr.bf16.mxu0 %v2221_v2 }
0x1195   :  { %v2179_v57 = vpop.eup %2178 }
0x1196   :  { %v1155_v61 = vmul.f32 %v2179_v57, %v2171_v59 }
0x1198   :  { %v1156_v62 = vpack.c.bf16 %v1155_v61, %v1154_v60 }
0x119a   :  { %2037 = vmatmul.mubr.msk.bf16.vlgmr.msra.gmra.mrb[20].mxu0 %vm277_vm5, %v1156_v62  ;;  %v1351_v62 = vrot.slane %v2542_v41, %v673_v10  ;;  %v2128_v10 = vld [vmem:[%s2703_s7 + $0x30] sm:$0xff]  }
0x119b   :  { %2048 = vmatprep.mubr.msk.bf16.mxu0 %vm2222_vm0, %v2221_v2  ;;  %2047 = vmatpush3.bf16.msra.mxu0 %v2122_v63 }
0x119c   :  { %2060 = vmatprep.subr.bf16.mxu0 %v2221_v2 }
0x1265   :  { %v1068_v1 = vpop.f32.mrb[16].mxu0 }
0x1266   :  { %v2026_v3 = vpop.f32.mrb[17].mxu0 }
0x1267   :  { %v1071_v6 = vpop.f32.mrb[18].mxu0 }
0x1268   :  { %v1075_v7 = vpack.c.bf16 %v1071_v6, %v1068_v1  ;;  %v2027_v9 = vpop.f32.mrb[19].mxu0  ;;  %v2127_v6 = vld [vmem:[%s2703_s7 + $0x28] sm:$0xff]  }
0x1269   :  { %v1363_v9 = vrot.slane %v2542_v41, %v2370_v50 }
0x126a   :  { %2049 = vmatmul.mubr.msk.bf16.vlgmr.msra.gmra.mrb[24].mxu0 %vm277_vm5, %v1075_v7  ;;  %v2129_v7 = vld [vmem:[%s2703_s7 + $0x38] sm:$0xff]  }
0x126b   :  { %2068 = vmatprep.mubr.msk.bf16.mxu0 %vm2222_vm0, %v2221_v2  ;;  %2061 = vmatpush3.bf16.msra.mxu0 %v2126_v5 }
0x126c   :  { %2062 = vmatprep.subr.bf16.mxu0 %v2221_v2 }
0x126d   :  { %v1197_v11 = vpop.f32.mrb[20].mxu0 }
0x126e   :  { %v2038_v13 = vpop.f32.mrb[21].mxu0 }
0x126f   :  { %v1200_v15 = vpop.f32.mrb[22].mxu0  ;;  %2063 = vmatpush3.bf16.msra.mxu0 %v2127_v6  ;;  %v1562_v6 = vmul.u32 8, %v2360_v44 }
0x1270   :  { %v1204_v16 = vpack.c.bf16 %v1200_v15, %v1197_v11  ;;  %v2039_v17 = vpop.f32.mrb[23].mxu0  ;;  %2064 = vmatprep.subr.bf16.mxu0 %v2221_v2 }
0x1271   :  { %vm1563_vm7 = vcmp.eq.s32.totalorder %v2339_v14, %v1562_v6  ;;  %v2131_v14 = vld [vmem:[%s2705_s9 + $0x8] sm:$0xff]  }
0x1272   :  { %2043 = vmatmul.mubr.msk.bf16.vlgmr.msra.gmra.mrb[36].mxu1 %vm277_vm5, %v1204_v16 }
0x1273   :  { %2056 = vmatprep.mubr.msk.bf16.mxu1 %vm2222_vm0, %v2221_v2  ;;  %2065 = vmatpush3.bf16.msra.mxu0 %v2128_v10 }
0x1274   :  { %2066 = vmatprep.subr.bf16.mxu0 %v2221_v2 }
0x1277   :  { %2067 = vmatpush3.bf16.msra.mxu0 %v2129_v7 }
0x1278   :  { %2086 = vmatprep.subr.mxu0 %v2221_v2 }
0x133d   :  { %v1301_v20 = vpop.f32.mrb[24].mxu0 }
0x133e   :  { %v2050_v18 = vpop.f32.mrb[25].mxu0 }
0x133f   :  { %v1304_v19 = vpop.f32.mrb[26].mxu0 }
0x1340   :  { %v2051_v21 = vpop.f32.mrb[27].mxu0 }
0x1345   :  { %v1251_v22 = vpop.f32.mrb[36].mxu1 }
0x1346   :  { %v1302_v23 = vadd.f32 %v1301_v20, %v1251_v22  ;;  %v2044_v24 = vpop.f32.mrb[37].mxu1 }
0x1347   :  { %v1254_v25 = vpop.f32.mrb[38].mxu1 }
0x1348   :  { %v1312_v8 = vadd.f32 %v1311_v4, %v1302_v23  ;;  %v1305_v26 = vadd.f32 %v1304_v19, %v1254_v25  ;;  %v2045_v28 = vpop.f32.mrb[39].mxu1 }
0x134a   :  { %v1313_v29 = vadd.f32 %v1311_v4, %v1305_v26  ;;  %v1314_v12 = vadd.f32 %v1312_v8, %v2530_v38 }
0x134c   :  { %v1316_v30 = vsel %vm165_vm4, %v1314_v12, 0.0  ;;  %v1315_v33 = vadd.f32 %v1313_v29, %v2532_v39  ;;  %v2124_v39 = vld [vmem:[%s2702_s6 + $0x10] sm:$0xff]  }
0x134d   :  { %1317 = vadd.xlane.f32.xlu0 %v1316_v30  ;;  %2053 = vmatpush3.bf16.msra.mxu1 %v2124_v39 }
0x134e   :  { %v1319_v34 = vsel %vm165_vm4, %v1315_v33, 0.0  ;;  %2054 = vmatprep.subr.bf16.mxu1 %v2221_v2 }
0x134f   :  { %1320 = vadd.xlane.f32.xlu1 %v1319_v34 }
0x1351   :  { %2055 = vmatpush3.bf16.msra.mxu1 %v2125_v47 }
0x1352   :  { %2072 = vmatprep.subr.bf16.mxu1 %v2221_v2 }
0x13da   :  { %v1318_v35 = vpop.xlane.xlu0 %1317 }
0x13db   :  { %v1322_v31 = vmul.f32 0.03125, %v1318_v35 }
0x13dc   :  { %v1321_v36 = vpop.xlane.xlu1 %1320 }
0x13dd   :  { %v1324_v37 = vsub.f32 %v1314_v12, %v1322_v31  ;;  %v1323_v40 = vmul.f32 0.03125, %v1321_v36  ;;  %v1451_v36 = vrot.slane %v2542_v41, %v771_v54 }
0x13df   :  { %v1325_v59 = vsub.f32 %v1315_v33, %v1323_v40  ;;  %v1326_v42 = vmul.f32 %v1324_v37, %v1324_v37 }
0x13e1   :  { %v1328_v43 = vsel %vm165_vm4, %v1326_v42, 0.0  ;;  %v1327_v46 = vmul.f32 %v1325_v59, %v1325_v59 }
0x13e2   :  { %1329 = vadd.xlane.f32.xlu0 %v1328_v43 }
0x13e3   :  { %v1331_v38 = vsel %vm165_vm4, %v1327_v46, 0.0 }
0x13e6   :  { %1332 = vadd.xlane.f32.xlu0 %v1331_v38 }
0x146f   :  { %v1330_v48 = vpop.xlane.xlu0 %1329 }
0x1470   :  { %v1334_v49 = vmul.f32 0.03125, %v1330_v48 }
0x1472   :  { %v1336_v52 = vadd.f32 1e-12, %v1334_v49 }
0x1473   :  { %v1333_v45 = vpop.xlane.xlu0 %1332 }
0x1474   :  { %2180 = vrsqrt.f32 %v1336_v52  ;;  %v1335_v53 = vmul.f32 0.03125, %v1333_v45 }
0x1476   :  { %v1337_v55 = vadd.f32 1e-12, %v1335_v53 }
0x1478   :  { %2182 = vrsqrt.f32 %v1337_v55 }
0x147e   :  { %v2181_v58 = vpop.eup %2180 }
0x147f   :  { %v1340_v51 = vmul.f32 %v2181_v58, %v1324_v37 }
0x1481   :  { %v1346_v60 = vmul.f32 %v1345_v56, %v1340_v51 }
0x1482   :  { %v2183_v57 = vpop.eup %2182 }
0x1483   :  { %v1341_v61 = vmul.f32 %v2183_v57, %v1325_v59  ;;  %v1352_v0 = vadd.f32 %v1351_v62, %v1346_v60 }
0x1485   :  { %v1347_v63 = vmul.f32 %v1345_v56, %v1341_v61 }
0x1487   :  { %v1353_v1 = vadd.f32 %v1351_v62, %v1347_v63 }
0x1489   :  { %v1354_v3 = vpack.c.bf16 %v1353_v1, %v1352_v0 }
0x148b   :  { %2057 = vmatmul.mubr.msk.bf16.vlgmr.msra.gmra.mrb[40].mxu1 %vm165_vm4, %v1354_v3  ;;  %v1551_v3 = vrot.slane %v2542_v41, %v872_v27 }
0x148c   :  { %2074 = vmatprep.mubr.msk.bf16.mxu1 %vm2222_vm0, %v2221_v2 }
0x155e   :  { %v1413_v11 = vpop.f32.mrb[40].mxu1 }
0x155f   :  { %v1414_v13 = vadd.f32 %v1413_v11, %v1363_v9  ;;  %v2058_v15 = vpop.f32.mrb[41].mxu1 }
0x1560   :  { %v1416_v16 = vpop.f32.mrb[42].mxu1 }
0x1561   :  { %v1422_v17 = vmul.f32 0.044715, %v1414_v13  ;;  %v1417_v20 = vadd.f32 %v1416_v16, %v1363_v9  ;;  %v2059_v18 = vpop.f32.mrb[43].mxu1  ;;  %v1420_v12 = vmul.f32 0.5, %v1414_v13  ;;  %v1564_v16 = vsel %vm1563_vm7, 1.0, %v2221_v2 }
0x1562   :  { %v1565_v27 = vpack.c.bf16 %v1564_v16, %v1564_v16 }
0x1563   :  { %v1424_v19 = vmul.f32 %v1422_v17, %v1414_v13  ;;  %v1423_v21 = vmul.f32 0.044715, %v1417_v20  ;;  %v1421_v30 = vmul.f32 0.5, %v1417_v20 }
0x1565   :  { %v1426_v4 = vmul.f32 %v1424_v19, %v1414_v13  ;;  %v1425_v22 = vmul.f32 %v1423_v21, %v1417_v20  ;;  %v2130_v19 = vld [vmem:[%s2705_s9] sm:$0xff]  }
0x1567   :  { %v1428_v23 = vadd.f32 %v1426_v4, %v1414_v13  ;;  %v1427_v24 = vmul.f32 %v1425_v22, %v1417_v20  ;;  %v1557_v13 = vrot.slane %v2542_v41, %v878_v32  ;;  %v1856_v22 = vld [vmem:[%s2707_s11] ss:$0 sm:$0xff]  ;;  %s2229_s11 = smov [#allocation2]  }
0x1568   :  { %s1776_s20 = sshll.u32 %s2229_s11, 4  ;;  %s1777_s20 = int_to_ptr.vmem [resolvable:$true] %s1776_s20 }
0x1569   :  { %v1430_v25 = vmul.f32 0.7978846, %v1428_v23  ;;  %v1429_v8 = vadd.f32 %v1427_v24, %v1417_v20  ;;  %s2196_s21 = scalar_lea.vmem %s1777_s20, 32  ;;  %p2201_p1 = scmp.lt.s32.totalorder %s1777_s20, %s1777_s20 }
0x156a   :  { %p2197_p0 = scmp.ne.s32.totalorder %s1777_s20, %s2196_s21  ;;  %p2202_p2 = scmp.lt.s32.totalorder %s2196_s21, %s2196_s21 }
0x156b   :  { %2184 = vtanh.f32 %v1430_v25  ;;  %v1431_v26 = vmul.f32 0.7978846, %v1429_v8 }
0x156c   :  { %p2203_p3 = por %p2202_p2, %p2201_p1 }
0x156d   :  { %2186 = vtanh.f32 %v1431_v26 }
0x156e   :  { %p2204_p4 = pnand %p2203_p3, %p2197_p0 }
0x1575   :  { %v2185_v28 = vpop.eup %2184 }
0x1576   :  { %v1434_v50 = vadd.f32 1.0, %v2185_v28 }
0x1577   :  { %v2187_v29 = vpop.eup %2186 }
0x1578   :  { %v1435_v33 = vadd.f32 1.0, %v2187_v29  ;;  %v1436_v34 = vmul.f32 %v1434_v50, %v1420_v12 }
0x157a   :  { %v1437_v35 = vmul.f32 %v1435_v33, %v1421_v30  ;;  %v1689_v33 = vld [vmem:[%s2706_s10] sm:$0x1f] }
0x157c   :  { %v1438_v31 = vpack.c.bf16 %v1437_v35, %v1436_v34 }
0x157e   :  { %2069 = vmatmul.mubr.msk.bf16.vlgmr.msra.gmra.mrb[28].mxu0 %vm797_vm6, %v1438_v31 }
0x157f   :  { %2088 = vmatprep.mubr.msk.f32.mxu0 %vm2222_vm0, %v2221_v2  ;;  %2087 = vmatpush3.msk.msra.mxu0 %vm1694_vm9, %v1689_v33 }
0x1651   :  { %v1513_v37 = vpop.f32.mrb[28].mxu0 }
0x1652   :  { %v1514_v40 = vadd.f32 %v1513_v37, %v1451_v36  ;;  %v2070_v59 = vpop.f32.mrb[29].mxu0 }
0x1653   :  { %v1516_v42 = vpop.f32.mrb[30].mxu0 }
0x1654   :  { %v1517_v43 = vadd.f32 %v1516_v42, %v1451_v36  ;;  %v2071_v46 = vpop.f32.mrb[31].mxu0  ;;  %v1520_v38 = vadd.f32 %v1514_v40, %v1352_v0 }
0x1656   :  { %v1522_v39 = vsel %vm165_vm4, %v1520_v38, 0.0  ;;  %v1521_v47 = vadd.f32 %v1517_v43, %v1353_v1 }
0x1657   :  { %1523 = vadd.xlane.f32.xlu0 %v1522_v39 }
0x1658   :  { %v1525_v48 = vsel %vm165_vm4, %v1521_v47, 0.0 }
0x1659   :  { %1526 = vadd.xlane.f32.xlu1 %v1525_v48 }
0x16e4   :  { %v1524_v49 = vpop.xlane.xlu0 %1523 }
0x16e5   :  { %v1528_v52 = vmul.f32 0.03125, %v1524_v49 }
0x16e6   :  { %v1527_v45 = vpop.xlane.xlu1 %1526 }
0x16e7   :  { %v1530_v53 = vsub.f32 %v1520_v38, %v1528_v52  ;;  %v1529_v55 = vmul.f32 0.03125, %v1527_v45 }
0x16e9   :  { %v1531_v54 = vsub.f32 %v1521_v47, %v1529_v55  ;;  %v1532_v58 = vmul.f32 %v1530_v53, %v1530_v53 }
0x16eb   :  { %v1534_v56 = vsel %vm165_vm4, %v1532_v58, 0.0  ;;  %v1533_v51 = vmul.f32 %v1531_v54, %v1531_v54 }
0x16ec   :  { %1535 = vadd.xlane.f32.xlu0 %v1534_v56 }
0x16ed   :  { %v1537_v57 = vsel %vm165_vm4, %v1533_v51, 0.0 }
0x16ee   :  { %1538 = vadd.xlane.f32.xlu1 %v1537_v57 }
0x1779   :  { %v1536_v60 = vpop.xlane.xlu0 %1535 }
0x177a   :  { %v1540_v61 = vmul.f32 0.03125, %v1536_v60 }
0x177b   :  { %v1539_v62 = vpop.xlane.xlu1 %1538 }
0x177c   :  { %v1542_v63 = vadd.f32 1e-12, %v1540_v61  ;;  %v1541_v0 = vmul.f32 0.03125, %v1539_v62 }
0x177e   :  { %2188 = vrsqrt.f32 %v1542_v63  ;;  %v1543_v1 = vadd.f32 1e-12, %v1541_v0 }
0x1780   :  { %2190 = vrsqrt.f32 %v1543_v1 }
0x1788   :  { %v2189_v5 = vpop.eup %2188 }
0x1789   :  { %v1546_v10 = vmul.f32 %v2189_v5, %v1530_v53 }
0x178a   :  { %v2191_v7 = vpop.eup %2190 }
0x178b   :  { %v1547_v9 = vmul.f32 %v2191_v7, %v1531_v54  ;;  %v1552_v11 = vmul.f32 %v1551_v3, %v1546_v10 }
0x178d   :  { %v1553_v15 = vmul.f32 %v1551_v3, %v1547_v9  ;;  %v1558_v17 = vadd.f32 %v1557_v13, %v1552_v11 }
0x178f   :  { %v1559_v20 = vadd.f32 %v1557_v13, %v1553_v15 }
0x1791   :  { %v1566_v18 = vpack.c.bf16 %v1559_v20, %v1558_v17 }
0x1793   :  { %2073 = vmatpush3.bf16.msra.mxu1 %v1566_v18 }
0x1794   :  { %2078 = vmatprep.subr.bf16.mxu1 %v2221_v2 }
0x1796   :  { %2075 = vmatmul.mubr.msk.bf16.vlgmr.msra.gmra.mrb[44].mxu1 %vm277_vm5, %v1565_v27 }
0x1797   :  { %2079 = vmatpush3.bf16.msra.mxu1 %v2130_v19  ;;  %2082 = vmatprep.mubr.msk.bf16.mxu1 %vm2222_vm0, %v2221_v2 }
0x1798   :  { %2080 = vmatprep.subr.bf16.mxu1 %v2221_v2 }
0x179b   :  { %2081 = vmatpush3.bf16.msra.mxu1 %v2131_v14 }
0x1869   :  { %v1604_v44 = vpop.f32.mrb[44].mxu1 }
0x186a   :  { %v1610_v32 = vpack.c.bf16 %v1604_v44, %v1604_v44  ;;  %v2076_v41 = vpop.f32.mrb[45].mxu1 }
0x186b   :  { %v1607_v21 = vpop.f32.mrb[46].mxu1 }
0x186c   :  { %2083 = vmatmul.mubr.msk.bf16.vlgmr.msra.gmra.mrb[48].mxu1 %vm165_vm4, %v1610_v32  ;;  %v2077_v4 = vpop.f32.mrb[47].mxu1 }
0x193f   :  { %v1671_v23 = vpop.f32.mrb[48].mxu1 }
0x1940   :  { %v1672_v24 = vadd.f32 %v1856_v22, %v1671_v23  ;;  %v2084_v2 = vpop.f32.mrb[49].mxu1 }
0x1941   :  { %v1674_v25 = vpop.f32.mrb[50].mxu1 }
0x1942   :  { %v1678_v8 = vsel %vm1677_vm8, %v1672_v24, -inf  ;;  %v2085_v26 = vpop.f32.mrb[51].mxu1 }
0x1943   :  { %1679 = vmax.xlane.f32.xlu0 %v1678_v8 }
0x19d0   :  { %v1680_v28 = vpop.xlane.xlu0 %1679 }
0x19d1   :  { %v1681_v50 = vsub.f32 %v1672_v24, %v1680_v28 }
0x19d3   :  { %v1682_v29 = vmul.f32 1.442695, %v1681_v50 }
0x19d5   :  { %2192 = vpow2.f32 %v1682_v29 }
0x19df   :  { %v2193_v12 = vpop.eup %2192 }
0x19e0   :  { %v1684_v30 = vsel %vm1677_vm8, %v2193_v12, 0.0 }
0x19e1   :  { %1685 = vadd.xlane.f32.xlu1 %v1684_v30 }
0x1a6e   :  { %v1686_v34 = vpop.xlane.xlu1 %1685 }
0x1a6f   :  { %2194 = vrcp.f32 %v1686_v34 }
0x1a79   :  { %v2195_v35 = vpop.eup %2194 }
0x1a7a   :  { %v1688_v31 = vmul.f32 %v2195_v35, %v2193_v12 }
0x1a7c   :  { %2089 = vmatmul.mubr.msk.f32.vlgmr.msra.gmra.mrb[32].mxu0 %vm1690_vm10, %v1688_v31 }
0x1b4f   :  { %v1764_v36 = vpop.f32.mrb[32].mxu0 }
0x1b50   :  { %v1768_v37 = vadd.f32 %v1764_v36, %v1672_v24  ;;  %v2090_v40 = vpop.f32.mrb[33].mxu0 }
0x1b52   :  { %1769 = vst [vmem:[#allocation2] sm:$0x3] %v1768_v37 }
0x1b53   :  { %2207 = shalt.err (!%p2204_p4)
}
0x1b54   :  { %s2208_s2 = scalar_lea.hbm %s2708_s12, 32 }
0x1b55   :  { %p2209_p5 = scmp.ne.s32.totalorder %s2708_s12, %s2208_s2  ;;  %p2212_p6 = scmp.lt.u32.totalorder %s2208_s2, %s2708_s12 }
0x1b57   :  { %p2214_p7 = pnand %p2212_p6, %p2209_p5 }
0x1b59   :  { %2217 = shalt.err (!%p2214_p7)
}
0x1b5a   :  { %1779 = dma.vmem_to_hbm [thread:$0]  %s1777_s20, 32, %s2708_s12, [#allocation3]  }
0x1b5b   :  { %2218 = dma.done.wait [#allocation3], 32  }
0x1b5c   :  { %2219 = vsyncadd [#allocation3], 4294967264 }
0x1b5d   :  { %1783 = vsyncpa [#allocation3], 1 }

</bundles_post_ra>
